<compile_context>
chip_gen: v7x
topology: tpu7x:2x2x1
jax: 0.10.0
libtpu: 0.0.40
codegen_flags: <defaults>
</compile_context>

<pallas_src>
from functools import partial

import jax
import jax.numpy as jnp
from jax.experimental import pallas as pl
from jax.experimental.pallas import tpu as pltpu

_EPS = 1e-5
_MAX_ROW_TILE = 4096      # lane-axis tile for the MLP kernels (rows / edges / nodes)
_MAX_NODE_TILE = 2048     # lane-axis node tile for the scatter output
_MAX_EDGE_TILE = 512      # edge (reduction) tile for the scatter
_VMEM_LIMIT = 32 * 1024 * 1024   # safe on v5e/v6e/v7x; tiles above stay well under it


def _round_up(a, b):
    return ((a + b - 1) // b) * b


def _leaky(h, alpha):
    return jnp.where(h >= 0, h, alpha * h)


def _bn_from_stats_fm(s_ref, h, g_ref, be_ref, inv_m):
    """Apply BatchNorm (feature-major) from accumulated [sum|sumsq] stats."""
    mu = s_ref[:, 0:1] * inv_m                       # [f, 1]
    var = s_ref[:, 1:2] * inv_m - mu * mu            # biased variance
    scale = jax.lax.rsqrt(var + _EPS) * g_ref[...]
    return (h - mu) * scale + be_ref[...]


# ---------------------------------------------------------------------------
# Kernel 1a: batch-stat sweep for the 3 BN layers of one MLP (feature-major).
# Grid = (phase in {0,1,2}, row_tile).  Phase p accumulates sum/sumsq of the
# input to BN layer p+1; later phases recompute earlier stages from the (now
# complete) stats, so intermediates never round-trip through HBM.
# Stats outputs [f, 2] use constant index_maps (resident accumulators).
# ---------------------------------------------------------------------------
def mlp3_stats_kernel(x_ref,
                      g1_ref, be1_ref, w1_ref, b1_ref,
                      g2_ref, be2_ref, w2_ref, b2_ref,
                      s1_ref, s2_ref, s3_ref,
                      *, alpha, m_actual, tile_m, need_mask):
    phase = pl.program_id(0)
    i = pl.program_id(1)

    @pl.when((phase == 0) & (i == 0))
    def _init():
        s1_ref[...] = jnp.zeros_like(s1_ref)
        s2_ref[...] = jnp.zeros_like(s2_ref)
        s3_ref[...] = jnp.zeros_like(s3_ref)

    inv_m = 1.0 / float(m_actual)
    x = x_ref[...]                                   # [f_in, tile_m]

    if need_mask:
        col_ids = i * tile_m + jax.lax.broadcasted_iota(jnp.int32, (1, tile_m), 1)
        valid = (col_ids < m_actual).astype(jnp.float32)   # [1, tile_m]
    else:
        valid = None

    def accum(s_ref, h, mask):
        hm = h if mask is None else h * mask
        s = jnp.sum(hm, axis=1, keepdims=True)
        ss = jnp.sum(hm * hm, axis=1, keepdims=True)
        s_ref[...] += jnp.concatenate([s, ss], axis=1)

    def stage1():
        h = _bn_from_stats_fm(s1_ref, x, g1_ref, be1_ref, inv_m)
        h = jnp.dot(w1_ref[...], h, preferred_element_type=jnp.float32) + b1_ref[...]
        return _leaky(h, alpha)

    def stage2(h1):
        h = _bn_from_stats_fm(s2_ref, h1, g2_ref, be2_ref, inv_m)
        h = jnp.dot(w2_ref[...], h, preferred_element_type=jnp.float32) + b2_ref[...]
        return _leaky(h, alpha)

    @pl.when(phase == 0)
    def _p0():
        # zero-padded columns contribute nothing to sum/sumsq -> no mask needed
        accum(s1_ref, x, None)

    @pl.when(phase == 1)
    def _p1():
        accum(s2_ref, stage1(), valid)

    @pl.when(phase == 2)
    def _p2():
        accum(s3_ref, stage2(stage1()), valid)


# ---------------------------------------------------------------------------
# Kernel 1b: apply the full 3-stage MLP with the BatchNorm affine already
# folded into the (feature-major) weights: matmul + bias + LeakyReLU only.
# Row axis is "parallel" (megacore); all params resident via constant maps.
# ---------------------------------------------------------------------------
def mlp3_apply_kernel(x_ref,
                      w1_ref, b1_ref, w2_ref, b2_ref, w3_ref, b3_ref,
                      o_ref, *, alpha):
    h = jnp.dot(w1_ref[...], x_ref[...], preferred_element_type=jnp.float32) + b1_ref[...]
    h = _leaky(h, alpha)
    h = jnp.dot(w2_ref[...], h, preferred_element_type=jnp.float32) + b2_ref[...]
    h = _leaky(h, alpha)
    o_ref[...] = jnp.dot(w3_ref[...], h, preferred_element_type=jnp.float32) + b3_ref[...]


def _fold_bn(gamma, beta, w, b, stats, m):
    """Fold BN(gamma,beta, batch stats) followed by Linear(w,b) into feature-major W', b'."""
    mu = stats[:, 0] / float(m)
    var = stats[:, 1] / float(m) - mu * mu
    s = gamma[0] * jax.lax.rsqrt(var + _EPS)              # [f]
    w_fm = (w * s[:, None]).T                             # [d_out, f]  == W^T diag(s)
    b_fm = (b[0] + (beta[0] - mu * s) @ w)[:, None]       # [d_out, 1]
    return w_fm, b_fm


def run_mlp(x_t, params, alpha):
    """x_t: feature-major [f_in, m].  Returns feature-major [d_out, m]."""
    (g1, be1, w1, b1, g2, be2, w2, b2, g3, be3, w3, b3) = params
    f_in, m = x_t.shape
    d = w1.shape[1]

    tile_m = min(_MAX_ROW_TILE, _round_up(m, 128))
    m_pad = _round_up(m, tile_m)
    if m_pad != m:
        x_t = jnp.pad(x_t, ((0, 0), (0, m_pad - m)))
    n_tiles = m_pad // tile_m
    need_mask = (m_pad != m)

    # feature-major copies of BN params / weights for the stats kernel
    g1t, be1t, w1t, b1t = g1.T, be1.T, w1.T, b1.T
    g2t, be2t, w2t, b2t = g2.T, be2.T, w2.T, b2.T

    # ---- pass 1: BN statistics (phase x row-tile grid, resident accumulators)
    row_spec2 = pl.BlockSpec((f_in, tile_m), lambda p, i: (0, i))

    def cspec2(a):
        return pl.BlockSpec(a.shape, lambda p, i: (0, 0))

    s1, s2, s3 = pl.pallas_call(
        partial(mlp3_stats_kernel, alpha=alpha, m_actual=m, tile_m=tile_m,
                need_mask=need_mask),
        grid=(3, n_tiles),
        out_shape=(jax.ShapeDtypeStruct((f_in, 2), jnp.float32),
                   jax.ShapeDtypeStruct((d, 2), jnp.float32),
                   jax.ShapeDtypeStruct((d, 2), jnp.float32)),
        in_specs=[row_spec2] + [cspec2(a) for a in (g1t, be1t, w1t, b1t,
                                                    g2t, be2t, w2t, b2t)],
        out_specs=(pl.BlockSpec((f_in, 2), lambda p, i: (0, 0)),
                   pl.BlockSpec((d, 2), lambda p, i: (0, 0)),
                   pl.BlockSpec((d, 2), lambda p, i: (0, 0))),
        compiler_params=pltpu.CompilerParams(
            dimension_semantics=("arbitrary", "arbitrary"),
            vmem_limit_bytes=_VMEM_LIMIT),
    )(x_t, g1t, be1t, w1t, b1t, g2t, be2t, w2t, b2t)

    # ---- fold BN into the linear weights (tiny plain-JAX matmuls)
    w1f, b1f = _fold_bn(g1, be1, w1, b1, s1, m)
    w2f, b2f = _fold_bn(g2, be2, w2, b2, s2, m)
    w3f, b3f = _fold_bn(g3, be3, w3, b3, s3, m)

    # ---- pass 2: tiled, pipelined apply ("parallel" row axis, lane-dense output)
    def cspec1(a):
        return pl.BlockSpec(a.shape, lambda i: (0, 0))

    out = pl.pallas_call(
        partial(mlp3_apply_kernel, alpha=alpha),
        grid=(n_tiles,),
        out_shape=jax.ShapeDtypeStruct((d, m_pad), jnp.float32),
        in_specs=[pl.BlockSpec((f_in, tile_m), lambda i: (0, i))]
                 + [cspec1(a) for a in (w1f, b1f, w2f, b2f, w3f, b3f)],
        out_specs=pl.BlockSpec((d, tile_m), lambda i: (0, i)),
        compiler_params=pltpu.CompilerParams(
            dimension_semantics=("parallel",),
            vmem_limit_bytes=_VMEM_LIMIT),
    )(x_t, w1f, b1f, w2f, b2f, w3f, b3f)
    return out[:, :m]


# ---------------------------------------------------------------------------
# Kernel 2: tiled scatter-mean (feature-major).
#   sel[e, n] = (col[e] == n);  [sums; counts] = [vals^T; 1] @ sel
# Grid = (node_tile [parallel], edge_tile [arbitrary, reduction]); the output
# block is the accumulator across edge tiles; exact division on the last tile.
# Padded edges carry col = -1, so they never match and contribute nothing.
# ---------------------------------------------------------------------------
def scatter_mean_kernel(col_ref, val_ref, o_ref, *, tile_n, d):
    e_idx = pl.program_id(1)

    @pl.when(e_idx == 0)
    def _init():
        o_ref[...] = jnp.zeros_like(o_ref)

    node_ids = pl.program_id(0) * tile_n + jax.lax.broadcasted_iota(
        jnp.int32, (col_ref.shape[0], tile_n), 1)
    sel = (col_ref[...] == node_ids).astype(jnp.float32)        # [tile_e, tile_n]
    o_ref[...] += jnp.dot(val_ref[...], sel, preferred_element_type=jnp.float32)

    @pl.when(e_idx == pl.num_programs(1) - 1)
    def _finalize():
        acc = o_ref[...]
        counts = acc[d:d + 1, :]                                # ones row = counts
        o_ref[...] = acc / jnp.maximum(counts, 1.0)             # exact division


def run_scatter_mean(col, vals_t, num_nodes):
    """col: [E] int targets; vals_t: feature-major [d, E].  Returns [d, num_nodes]."""
    d, e = vals_t.shape

    tile_e = min(_MAX_EDGE_TILE, _round_up(e, 128))
    e_pad = _round_up(e, tile_e)
    tile_n = min(_MAX_NODE_TILE, _round_up(num_nodes, 128))
    n_pad = _round_up(num_nodes, tile_n)

    # Fold the count into the matmul: append a ones ROW (d -> d+1).
    vals_aug = jnp.concatenate([vals_t, jnp.ones((1, e), vals_t.dtype)], axis=0)
    if e_pad != e:
        vals_aug = jnp.pad(vals_aug, ((0, 0), (0, e_pad - e)))
    col_p = jnp.pad(col.astype(jnp.int32), (0, e_pad - e),
                    constant_values=-1).reshape(e_pad, 1)

    out = pl.pallas_call(
        partial(scatter_mean_kernel, tile_n=tile_n, d=d),
        grid=(n_pad // tile_n, e_pad // tile_e),
        out_shape=jax.ShapeDtypeStruct((d + 1, n_pad), jnp.float32),
        in_specs=[pl.BlockSpec((tile_e, 1), lambda n, e_: (e_, 0)),
                  pl.BlockSpec((d + 1, tile_e), lambda n, e_: (0, e_))],
        out_specs=pl.BlockSpec((d + 1, tile_n), lambda n, e_: (0, n)),
        compiler_params=pltpu.CompilerParams(
            dimension_semantics=("parallel", "arbitrary"),
            vmem_limit_bytes=_VMEM_LIMIT),
    )(col_p, vals_aug)
    return out[:d, :num_nodes]


# ---------------------------------------------------------------------------
# Parameter construction (deterministic, synthetic).
# ---------------------------------------------------------------------------
def _make_mlp_params(key, f_in, f_out):
    keys = jax.random.split(key, 12)
    dims = [(f_in, f_out), (f_out, f_out), (f_out, f_out)]
    params = []
    ki = 0
    for (din, dout) in dims:
        gamma = 1.0 + 0.1 * jax.random.normal(keys[ki], (1, din), jnp.float32); ki += 1
        beta = 0.1 * jax.random.normal(keys[ki], (1, din), jnp.float32); ki += 1
        w = jax.random.normal(keys[ki], (din, dout), jnp.float32) / jnp.sqrt(din); ki += 1
        b = 0.1 * jax.random.normal(keys[ki], (1, dout), jnp.float32); ki += 1
        params.extend([gamma, beta, w, b])
    return tuple(params)


# ---------------------------------------------------------------------------
# Full NodeModel forward (feature-major pipeline, single transpose at the end).
# ---------------------------------------------------------------------------
def node_model_forward(x, edge_index, edge_attr, params1, params2, alpha):
    row = edge_index[0]
    col = edge_index[1]
    x_t = x.T                                                  # [node_in, N]
    # glue: gather source-node features (columns) and concat with edge features
    h_t = jnp.concatenate([x_t[:, row], edge_attr.T], axis=0)  # [node_in+edge_in, E]
    h_t = run_mlp(h_t, params1, alpha)                         # [node_out, E]
    agg_t = run_scatter_mean(col, h_t, x.shape[0])             # [node_out, N]
    h2_t = jnp.concatenate([x_t, agg_t], axis=0)               # [node_in+node_out, N]
    out_t = run_mlp(h2_t, params2, alpha)                      # [node_out, N]
    return out_t.T                                             # [N, node_out]


if __name__ == "__main__":
    node_in, node_out, edge_in = 8, 16, 4
    leakiness = 0.1
    n_nodes, n_edges = 8, 16

    key = jax.random.PRNGKey(0)
    k_x, k_e, k_ei, k_p1, k_p2 = jax.random.split(key, 5)

    x = jax.random.normal(k_x, (n_nodes, node_in), jnp.float32)
    edge_attr = jax.random.normal(k_e, (n_edges, edge_in), jnp.float32)
    edge_index = jax.random.randint(k_ei, (2, n_edges), 0, n_nodes, jnp.int32)

    params1 = _make_mlp_params(k_p1, node_in + edge_in, node_out)
    params2 = _make_mlp_params(k_p2, node_in + node_out, node_out)

    fwd = jax.jit(partial(node_model_forward, alpha=leakiness))
    out = fwd(x, edge_index, edge_attr, params1, params2)
    jax.block_until_ready(out)
    assert out.shape == (n_nodes, node_out)
    print("KERNEL_OK")
</pallas_src>

<mosaic_0001>
module attributes {stable_mosaic.version = 11 : i64} {
  func.func @mlp3_stats_kernel(%arg0: i32, %arg1: i32, %arg2: memref<12x128xf32, #tpu.memory_space<vmem>>, %arg3: memref<12x1xf32, #tpu.memory_space<vmem>>, %arg4: memref<12x1xf32, #tpu.memory_space<vmem>>, %arg5: memref<16x12xf32, #tpu.memory_space<vmem>>, %arg6: memref<16x1xf32, #tpu.memory_space<vmem>>, %arg7: memref<16x1xf32, #tpu.memory_space<vmem>>, %arg8: memref<16x1xf32, #tpu.memory_space<vmem>>, %arg9: memref<16x16xf32, #tpu.memory_space<vmem>>, %arg10: memref<16x1xf32, #tpu.memory_space<vmem>>, %arg11: memref<12x2xf32, #tpu.memory_space<vmem>>, %arg12: memref<16x2xf32, #tpu.memory_space<vmem>>, %arg13: memref<16x2xf32, #tpu.memory_space<vmem>>) attributes {dimension_semantics = [#tpu.dimension_semantics<arbitrary>, #tpu.dimension_semantics<arbitrary>], iteration_bounds = array<i64: 3, 1>, scalar_prefetch = 0 : i64, scratch_operands = 0 : i64, tpu.core_type = #tpu.core_type<tc>, window_params = [{transform_indices = @transform_0, window_bounds = array<i64: 12, 128>}, {pipeline_mode = #tpu.pipeline_mode<synchronous>, transform_indices = @transform_1, window_bounds = array<i64: 12, 1>}, {pipeline_mode = #tpu.pipeline_mode<synchronous>, transform_indices = @transform_2, window_bounds = array<i64: 12, 1>}, {pipeline_mode = #tpu.pipeline_mode<synchronous>, transform_indices = @transform_3, window_bounds = array<i64: 16, 12>}, {pipeline_mode = #tpu.pipeline_mode<synchronous>, transform_indices = @transform_4, window_bounds = array<i64: 16, 1>}, {pipeline_mode = #tpu.pipeline_mode<synchronous>, transform_indices = @transform_5, window_bounds = array<i64: 16, 1>}, {pipeline_mode = #tpu.pipeline_mode<synchronous>, transform_indices = @transform_6, window_bounds = array<i64: 16, 1>}, {pipeline_mode = #tpu.pipeline_mode<synchronous>, transform_indices = @transform_7, window_bounds = array<i64: 16, 16>}, {pipeline_mode = #tpu.pipeline_mode<synchronous>, transform_indices = @transform_8, window_bounds = array<i64: 16, 1>}, {pipeline_mode = #tpu.pipeline_mode<synchronous>, transform_indices = @transform_9, window_bounds = array<i64: 12, 2>}, {pipeline_mode = #tpu.pipeline_mode<synchronous>, transform_indices = @transform_10, window_bounds = array<i64: 16, 2>}, {pipeline_mode = #tpu.pipeline_mode<synchronous>, transform_indices = @transform_11, window_bounds = array<i64: 16, 2>}]} {
    %c0_i32 = arith.constant 0 : i32
    %0 = arith.cmpi eq, %arg0, %c0_i32 : i32
    %c0_i32_0 = arith.constant 0 : i32
    %1 = arith.cmpi eq, %arg1, %c0_i32_0 : i32
    %2 = arith.andi %0, %1 : i1
    %3 = arith.extui %2 : i1 to i32
    %c0_i32_1 = arith.constant 0 : i32
    %4 = arith.cmpi ne, %3, %c0_i32_1 : i32
    scf.if %4 {
      %cst = arith.constant 0.000000e+00 : f32
      %23 = vector.broadcast %cst : f32 to vector<12x2xf32>
      %c0_7 = arith.constant 0 : index
      %c0_8 = arith.constant 0 : index
      %24 = vector.load %arg11[%c0_7, %c0_8] : memref<12x2xf32, #tpu.memory_space<vmem>>, vector<12x2xf32>
      tpu.vector_store %arg11[%c0_7, %c0_8], %23 {strides = array<i32>} : memref<12x2xf32, #tpu.memory_space<vmem>>, vector<12x2xf32>,
      %cst_9 = arith.constant 0.000000e+00 : f32
      %25 = vector.broadcast %cst_9 : f32 to vector<16x2xf32>
      %c0_10 = arith.constant 0 : index
      %c0_11 = arith.constant 0 : index
      %26 = vector.load %arg12[%c0_10, %c0_11] : memref<16x2xf32, #tpu.memory_space<vmem>>, vector<16x2xf32>
      tpu.vector_store %arg12[%c0_10, %c0_11], %25 {strides = array<i32>} : memref<16x2xf32, #tpu.memory_space<vmem>>, vector<16x2xf32>,
      %cst_12 = arith.constant 0.000000e+00 : f32
      %27 = vector.broadcast %cst_12 : f32 to vector<16x2xf32>
      %c0_13 = arith.constant 0 : index
      %c0_14 = arith.constant 0 : index
      %28 = vector.load %arg13[%c0_13, %c0_14] : memref<16x2xf32, #tpu.memory_space<vmem>>, vector<16x2xf32>
      tpu.vector_store %arg13[%c0_13, %c0_14], %27 {strides = array<i32>} : memref<16x2xf32, #tpu.memory_space<vmem>>, vector<16x2xf32>,
    } else {
    }
    %c0 = arith.constant 0 : index
    %c0_2 = arith.constant 0 : index
    %5 = vector.load %arg2[%c0, %c0_2] : memref<12x128xf32, #tpu.memory_space<vmem>>, vector<12x128xf32>
    %c128_i32 = arith.constant 128 : i32
    %6 = arith.muli %arg1, %c128_i32 : i32
    %7 = tpu.iota {dimensions = array<i32: 1>} : vector<1x128xi32>
    %8 = vector.broadcast %6 : i32 to vector<1x128xi32>
    %9 = arith.addi %8, %7 : vector<1x128xi32>
    %c16_i32 = arith.constant 16 : i32
    %10 = vector.broadcast %c16_i32 : i32 to vector<1x128xi32>
    %11 = arith.cmpi slt, %9, %10 : vector<1x128xi32>
    %12 = arith.extui %11 : vector<1x128xi1> to vector<1x128xi32>
    %13 = arith.sitofp %12 : vector<1x128xi32> to vector<1x128xf32>
    %c0_i32_3 = arith.constant 0 : i32
    %14 = arith.cmpi eq, %arg0, %c0_i32_3 : i32
    %15 = arith.extui %14 : i1 to i32
    %c0_i32_4 = arith.constant 0 : i32
    %16 = arith.cmpi ne, %15, %c0_i32_4 : i32
    scf.if %16 {
      %cst = arith.constant dense<0.000000e+00> : vector<12xf32>
      %23 = vector.multi_reduction <add>, %5, %cst [1] : vector<12x128xf32> to vector<12xf32>
      %24 = vector.shape_cast %23 : vector<12xf32> to vector<12x1xf32>
      %25 = arith.mulf %5, %5 : vector<12x128xf32>
      %cst_7 = arith.constant dense<0.000000e+00> : vector<12xf32>
      %26 = vector.multi_reduction <add>, %25, %cst_7 [1] : vector<12x128xf32> to vector<12xf32>
      %27 = vector.shape_cast %26 : vector<12xf32> to vector<12x1xf32>
      %c0_8 = arith.constant 0 : index
      %c0_9 = arith.constant 0 : index
      %28 = vector.load %arg11[%c0_8, %c0_9] : memref<12x2xf32, #tpu.memory_space<vmem>>, vector<12x2xf32>
      %29 = tpu.concatenate %24, %27 in 1 : vector<12x1xf32>, vector<12x1xf32> -> vector<12x2xf32>
      %30 = arith.addf %28, %29 : vector<12x2xf32>
      %c0_10 = arith.constant 0 : index
      %c0_11 = arith.constant 0 : index
      %31 = vector.load %arg11[%c0_10, %c0_11] : memref<12x2xf32, #tpu.memory_space<vmem>>, vector<12x2xf32>
      tpu.vector_store %arg11[%c0_10, %c0_11], %30 {strides = array<i32>} : memref<12x2xf32, #tpu.memory_space<vmem>>, vector<12x2xf32>,
    } else {
    }
    %c1_i32 = arith.constant 1 : i32
    %17 = arith.cmpi eq, %arg0, %c1_i32 : i32
    %18 = arith.extui %17 : i1 to i32
    %c0_i32_5 = arith.constant 0 : i32
    %19 = arith.cmpi ne, %18, %c0_i32_5 : i32
    scf.if %19 {
      %c0_7 = arith.constant 0 : index
      %c0_8 = arith.constant 0 : index
      %23 = vector.load %arg11[%c0_7, %c0_8] : memref<12x2xf32, #tpu.memory_space<vmem>>, vector<12x1xf32>
      %cst = arith.constant 6.250000e-02 : f32
      %24 = vector.broadcast %cst : f32 to vector<12x1xf32>
      %25 = arith.mulf %23, %24 : vector<12x1xf32>
      %c0_9 = arith.constant 0 : index
      %c1 = arith.constant 1 : index
      %26 = vector.load %arg11[%c0_9, %c1] : memref<12x2xf32, #tpu.memory_space<vmem>>, vector<12x1xf32>
      %cst_10 = arith.constant 6.250000e-02 : f32
      %27 = vector.broadcast %cst_10 : f32 to vector<12x1xf32>
      %28 = arith.mulf %26, %27 : vector<12x1xf32>
      %29 = arith.mulf %25, %25 : vector<12x1xf32>
      %30 = arith.subf %28, %29 : vector<12x1xf32>
      %cst_11 = arith.constant 9.99999974E-6 : f32
      %31 = vector.broadcast %cst_11 : f32 to vector<12x1xf32>
      %32 = arith.addf %30, %31 : vector<12x1xf32>
      %33 = math.rsqrt %32 : vector<12x1xf32>
      %c0_12 = arith.constant 0 : index
      %c0_13 = arith.constant 0 : index
      %34 = vector.load %arg3[%c0_12, %c0_13] : memref<12x1xf32, #tpu.memory_space<vmem>>, vector<12x1xf32>
      %35 = arith.mulf %33, %34 : vector<12x1xf32>
      %36 = vector.broadcast %25 : vector<12x1xf32> to vector<12x128xf32>
      %37 = arith.subf %5, %36 : vector<12x128xf32>
      %38 = vector.broadcast %35 : vector<12x1xf32> to vector<12x128xf32>
      %39 = arith.mulf %37, %38 : vector<12x128xf32>
      %c0_14 = arith.constant 0 : index
      %c0_15 = arith.constant 0 : index
      %40 = vector.load %arg4[%c0_14, %c0_15] : memref<12x1xf32, #tpu.memory_space<vmem>>, vector<12x1xf32>
      %41 = vector.broadcast %40 : vector<12x1xf32> to vector<12x128xf32>
      %42 = arith.addf %39, %41 : vector<12x128xf32>
      %c0_16 = arith.constant 0 : index
      %c0_17 = arith.constant 0 : index
      %43 = vector.load %arg5[%c0_16, %c0_17] : memref<16x12xf32, #tpu.memory_space<vmem>>, vector<16x12xf32>
      %cst_18 = arith.constant dense<0.000000e+00> : vector<16x128xf32>
      %44 = tpu.matmul %43, %42, %cst_18 {dimension_numbers = #tpu.dot_dimension_numbers<[1], [0], [0], [1], [0, 0, 1, 1], [], []>} : vector<16x12xf32>, vector<12x128xf32>, vector<16x128xf32> -> vector<16x128xf32>
      %c0_19 = arith.constant 0 : index
      %c0_20 = arith.constant 0 : index
      %45 = vector.load %arg6[%c0_19, %c0_20] : memref<16x1xf32, #tpu.memory_space<vmem>>, vector<16x1xf32>
      %46 = vector.broadcast %45 : vector<16x1xf32> to vector<16x128xf32>
      %47 = arith.addf %44, %46 : vector<16x128xf32>
      %cst_21 = arith.constant 0.000000e+00 : f32
      %48 = vector.broadcast %cst_21 : f32 to vector<16x128xf32>
      %49 = arith.cmpf oge, %47, %48 : vector<16x128xf32>
      %cst_22 = arith.constant 1.000000e-01 : f32
      %50 = vector.broadcast %cst_22 : f32 to vector<16x128xf32>
      %51 = arith.mulf %50, %47 : vector<16x128xf32>
      %52 = arith.select %49, %47, %51 : vector<16x128xi1>, vector<16x128xf32>
      %53 = vector.broadcast %13 : vector<1x128xf32> to vector<16x128xf32>
      %54 = arith.mulf %52, %53 : vector<16x128xf32>
      %cst_23 = arith.constant dense<0.000000e+00> : vector<16xf32>
      %55 = vector.multi_reduction <add>, %54, %cst_23 [1] : vector<16x128xf32> to vector<16xf32>
      %56 = vector.shape_cast %55 : vector<16xf32> to vector<16x1xf32>
      %57 = arith.mulf %54, %54 : vector<16x128xf32>
      %cst_24 = arith.constant dense<0.000000e+00> : vector<16xf32>
      %58 = vector.multi_reduction <add>, %57, %cst_24 [1] : vector<16x128xf32> to vector<16xf32>
      %59 = vector.shape_cast %58 : vector<16xf32> to vector<16x1xf32>
      %c0_25 = arith.constant 0 : index
      %c0_26 = arith.constant 0 : index
      %60 = vector.load %arg12[%c0_25, %c0_26] : memref<16x2xf32, #tpu.memory_space<vmem>>, vector<16x2xf32>
      %61 = tpu.concatenate %56, %59 in 1 : vector<16x1xf32>, vector<16x1xf32> -> vector<16x2xf32>
      %62 = arith.addf %60, %61 : vector<16x2xf32>
      %c0_27 = arith.constant 0 : index
      %c0_28 = arith.constant 0 : index
      %63 = vector.load %arg12[%c0_27, %c0_28] : memref<16x2xf32, #tpu.memory_space<vmem>>, vector<16x2xf32>
      tpu.vector_store %arg12[%c0_27, %c0_28], %62 {strides = array<i32>} : memref<16x2xf32, #tpu.memory_space<vmem>>, vector<16x2xf32>,
    } else {
    }
    %c2_i32 = arith.constant 2 : i32
    %20 = arith.cmpi eq, %arg0, %c2_i32 : i32
    %21 = arith.extui %20 : i1 to i32
    %c0_i32_6 = arith.constant 0 : i32
    %22 = arith.cmpi ne, %21, %c0_i32_6 : i32
    scf.if %22 {
      %c0_7 = arith.constant 0 : index
      %c0_8 = arith.constant 0 : index
      %23 = vector.load %arg11[%c0_7, %c0_8] : memref<12x2xf32, #tpu.memory_space<vmem>>, vector<12x1xf32>
      %cst = arith.constant 6.250000e-02 : f32
      %24 = vector.broadcast %cst : f32 to vector<12x1xf32>
      %25 = arith.mulf %23, %24 : vector<12x1xf32>
      %c0_9 = arith.constant 0 : index
      %c1 = arith.constant 1 : index
      %26 = vector.load %arg11[%c0_9, %c1] : memref<12x2xf32, #tpu.memory_space<vmem>>, vector<12x1xf32>
      %cst_10 = arith.constant 6.250000e-02 : f32
      %27 = vector.broadcast %cst_10 : f32 to vector<12x1xf32>
      %28 = arith.mulf %26, %27 : vector<12x1xf32>
      %29 = arith.mulf %25, %25 : vector<12x1xf32>
      %30 = arith.subf %28, %29 : vector<12x1xf32>
      %cst_11 = arith.constant 9.99999974E-6 : f32
      %31 = vector.broadcast %cst_11 : f32 to vector<12x1xf32>
      %32 = arith.addf %30, %31 : vector<12x1xf32>
      %33 = math.rsqrt %32 : vector<12x1xf32>
      %c0_12 = arith.constant 0 : index
      %c0_13 = arith.constant 0 : index
      %34 = vector.load %arg3[%c0_12, %c0_13] : memref<12x1xf32, #tpu.memory_space<vmem>>, vector<12x1xf32>
      %35 = arith.mulf %33, %34 : vector<12x1xf32>
      %36 = vector.broadcast %25 : vector<12x1xf32> to vector<12x128xf32>
      %37 = arith.subf %5, %36 : vector<12x128xf32>
      %38 = vector.broadcast %35 : vector<12x1xf32> to vector<12x128xf32>
      %39 = arith.mulf %37, %38 : vector<12x128xf32>
      %c0_14 = arith.constant 0 : index
      %c0_15 = arith.constant 0 : index
      %40 = vector.load %arg4[%c0_14, %c0_15] : memref<12x1xf32, #tpu.memory_space<vmem>>, vector<12x1xf32>
      %41 = vector.broadcast %40 : vector<12x1xf32> to vector<12x128xf32>
      %42 = arith.addf %39, %41 : vector<12x128xf32>
      %c0_16 = arith.constant 0 : index
      %c0_17 = arith.constant 0 : index
      %43 = vector.load %arg5[%c0_16, %c0_17] : memref<16x12xf32, #tpu.memory_space<vmem>>, vector<16x12xf32>
      %cst_18 = arith.constant dense<0.000000e+00> : vector<16x128xf32>
      %44 = tpu.matmul %43, %42, %cst_18 {dimension_numbers = #tpu.dot_dimension_numbers<[1], [0], [0], [1], [0, 0, 1, 1], [], []>} : vector<16x12xf32>, vector<12x128xf32>, vector<16x128xf32> -> vector<16x128xf32>
      %c0_19 = arith.constant 0 : index
      %c0_20 = arith.constant 0 : index
      %45 = vector.load %arg6[%c0_19, %c0_20] : memref<16x1xf32, #tpu.memory_space<vmem>>, vector<16x1xf32>
      %46 = vector.broadcast %45 : vector<16x1xf32> to vector<16x128xf32>
      %47 = arith.addf %44, %46 : vector<16x128xf32>
      %cst_21 = arith.constant 0.000000e+00 : f32
      %48 = vector.broadcast %cst_21 : f32 to vector<16x128xf32>
      %49 = arith.cmpf oge, %47, %48 : vector<16x128xf32>
      %cst_22 = arith.constant 1.000000e-01 : f32
      %50 = vector.broadcast %cst_22 : f32 to vector<16x128xf32>
      %51 = arith.mulf %50, %47 : vector<16x128xf32>
      %52 = arith.select %49, %47, %51 : vector<16x128xi1>, vector<16x128xf32>
      %c0_23 = arith.constant 0 : index
      %c0_24 = arith.constant 0 : index
      %53 = vector.load %arg12[%c0_23, %c0_24] : memref<16x2xf32, #tpu.memory_space<vmem>>, vector<16x1xf32>
      %cst_25 = arith.constant 6.250000e-02 : f32
      %54 = vector.broadcast %cst_25 : f32 to vector<16x1xf32>
      %55 = arith.mulf %53, %54 : vector<16x1xf32>
      %c0_26 = arith.constant 0 : index
      %c1_27 = arith.constant 1 : index
      %56 = vector.load %arg12[%c0_26, %c1_27] : memref<16x2xf32, #tpu.memory_space<vmem>>, vector<16x1xf32>
      %cst_28 = arith.constant 6.250000e-02 : f32
      %57 = vector.broadcast %cst_28 : f32 to vector<16x1xf32>
      %58 = arith.mulf %56, %57 : vector<16x1xf32>
      %59 = arith.mulf %55, %55 : vector<16x1xf32>
      %60 = arith.subf %58, %59 : vector<16x1xf32>
      %cst_29 = arith.constant 9.99999974E-6 : f32
      %61 = vector.broadcast %cst_29 : f32 to vector<16x1xf32>
      %62 = arith.addf %60, %61 : vector<16x1xf32>
      %63 = math.rsqrt %62 : vector<16x1xf32>
      %c0_30 = arith.constant 0 : index
      %c0_31 = arith.constant 0 : index
      %64 = vector.load %arg7[%c0_30, %c0_31] : memref<16x1xf32, #tpu.memory_space<vmem>>, vector<16x1xf32>
      %65 = arith.mulf %63, %64 : vector<16x1xf32>
      %66 = vector.broadcast %55 : vector<16x1xf32> to vector<16x128xf32>
      %67 = arith.subf %52, %66 : vector<16x128xf32>
      %68 = vector.broadcast %65 : vector<16x1xf32> to vector<16x128xf32>
      %69 = arith.mulf %67, %68 : vector<16x128xf32>
      %c0_32 = arith.constant 0 : index
      %c0_33 = arith.constant 0 : index
      %70 = vector.load %arg8[%c0_32, %c0_33] : memref<16x1xf32, #tpu.memory_space<vmem>>, vector<16x1xf32>
      %71 = vector.broadcast %70 : vector<16x1xf32> to vector<16x128xf32>
      %72 = arith.addf %69, %71 : vector<16x128xf32>
      %c0_34 = arith.constant 0 : index
      %c0_35 = arith.constant 0 : index
      %73 = vector.load %arg9[%c0_34, %c0_35] : memref<16x16xf32, #tpu.memory_space<vmem>>, vector<16x16xf32>
      %cst_36 = arith.constant dense<0.000000e+00> : vector<16x128xf32>
      %74 = tpu.matmul %73, %72, %cst_36 {dimension_numbers = #tpu.dot_dimension_numbers<[1], [0], [0], [1], [0, 0, 1, 1], [], []>} : vector<16x16xf32>, vector<16x128xf32>, vector<16x128xf32> -> vector<16x128xf32>
      %c0_37 = arith.constant 0 : index
      %c0_38 = arith.constant 0 : index
      %75 = vector.load %arg10[%c0_37, %c0_38] : memref<16x1xf32, #tpu.memory_space<vmem>>, vector<16x1xf32>
      %76 = vector.broadcast %75 : vector<16x1xf32> to vector<16x128xf32>
      %77 = arith.addf %74, %76 : vector<16x128xf32>
      %cst_39 = arith.constant 0.000000e+00 : f32
      %78 = vector.broadcast %cst_39 : f32 to vector<16x128xf32>
      %79 = arith.cmpf oge, %77, %78 : vector<16x128xf32>
      %cst_40 = arith.constant 1.000000e-01 : f32
      %80 = vector.broadcast %cst_40 : f32 to vector<16x128xf32>
      %81 = arith.mulf %80, %77 : vector<16x128xf32>
      %82 = arith.select %79, %77, %81 : vector<16x128xi1>, vector<16x128xf32>
      %83 = vector.broadcast %13 : vector<1x128xf32> to vector<16x128xf32>
      %84 = arith.mulf %82, %83 : vector<16x128xf32>
      %cst_41 = arith.constant dense<0.000000e+00> : vector<16xf32>
      %85 = vector.multi_reduction <add>, %84, %cst_41 [1] : vector<16x128xf32> to vector<16xf32>
      %86 = vector.shape_cast %85 : vector<16xf32> to vector<16x1xf32>
      %87 = arith.mulf %84, %84 : vector<16x128xf32>
      %cst_42 = arith.constant dense<0.000000e+00> : vector<16xf32>
      %88 = vector.multi_reduction <add>, %87, %cst_42 [1] : vector<16x128xf32> to vector<16xf32>
      %89 = vector.shape_cast %88 : vector<16xf32> to vector<16x1xf32>
      %c0_43 = arith.constant 0 : index
      %c0_44 = arith.constant 0 : index
      %90 = vector.load %arg13[%c0_43, %c0_44] : memref<16x2xf32, #tpu.memory_space<vmem>>, vector<16x2xf32>
      %91 = tpu.concatenate %86, %89 in 1 : vector<16x1xf32>, vector<16x1xf32> -> vector<16x2xf32>
      %92 = arith.addf %90, %91 : vector<16x2xf32>
      %c0_45 = arith.constant 0 : index
      %c0_46 = arith.constant 0 : index
      %93 = vector.load %arg13[%c0_45, %c0_46] : memref<16x2xf32, #tpu.memory_space<vmem>>, vector<16x2xf32>
      tpu.vector_store %arg13[%c0_45, %c0_46], %92 {strides = array<i32>} : memref<16x2xf32, #tpu.memory_space<vmem>>, vector<16x2xf32>,
    } else {
    }
    return
  }
  func.func @transform_0(%arg0: i32, %arg1: i32) -> (i32, i32) {
    %c0_i32 = arith.constant 0 : i32
    %c0_i32_0 = arith.constant 0 : i32
    return %c0_i32, %arg1 : i32, i32
  }
  func.func @transform_1(%arg0: i32, %arg1: i32) -> (i32, i32) {
    %c0_i32 = arith.constant 0 : i32
    %c0_i32_0 = arith.constant 0 : i32
    %c0_i32_1 = arith.constant 0 : i32
    return %c0_i32, %c0_i32_0 : i32, i32
  }
  func.func @transform_2(%arg0: i32, %arg1: i32) -> (i32, i32) {
    %c0_i32 = arith.constant 0 : i32
    %c0_i32_0 = arith.constant 0 : i32
    %c0_i32_1 = arith.constant 0 : i32
    return %c0_i32, %c0_i32_0 : i32, i32
  }
  func.func @transform_3(%arg0: i32, %arg1: i32) -> (i32, i32) {
    %c0_i32 = arith.constant 0 : i32
    %c0_i32_0 = arith.constant 0 : i32
    %c0_i32_1 = arith.constant 0 : i32
    return %c0_i32, %c0_i32_0 : i32, i32
  }
  func.func @transform_4(%arg0: i32, %arg1: i32) -> (i32, i32) {
    %c0_i32 = arith.constant 0 : i32
    %c0_i32_0 = arith.constant 0 : i32
    %c0_i32_1 = arith.constant 0 : i32
    return %c0_i32, %c0_i32_0 : i32, i32
  }
  func.func @transform_5(%arg0: i32, %arg1: i32) -> (i32, i32) {
    %c0_i32 = arith.constant 0 : i32
    %c0_i32_0 = arith.constant 0 : i32
    %c0_i32_1 = arith.constant 0 : i32
    return %c0_i32, %c0_i32_0 : i32, i32
  }
  func.func @transform_6(%arg0: i32, %arg1: i32) -> (i32, i32) {
    %c0_i32 = arith.constant 0 : i32
    %c0_i32_0 = arith.constant 0 : i32
    %c0_i32_1 = arith.constant 0 : i32
    return %c0_i32, %c0_i32_0 : i32, i32
  }
  func.func @transform_7(%arg0: i32, %arg1: i32) -> (i32, i32) {
    %c0_i32 = arith.constant 0 : i32
    %c0_i32_0 = arith.constant 0 : i32
    %c0_i32_1 = arith.constant 0 : i32
    return %c0_i32, %c0_i32_0 : i32, i32
  }
  func.func @transform_8(%arg0: i32, %arg1: i32) -> (i32, i32) {
    %c0_i32 = arith.constant 0 : i32
    %c0_i32_0 = arith.constant 0 : i32
    %c0_i32_1 = arith.constant 0 : i32
    return %c0_i32, %c0_i32_0 : i32, i32
  }
  func.func @transform_9(%arg0: i32, %arg1: i32) -> (i32, i32) {
    %c0_i32 = arith.constant 0 : i32
    %c0_i32_0 = arith.constant 0 : i32
    %c0_i32_1 = arith.constant 0 : i32
    return %c0_i32, %c0_i32_0 : i32, i32
  }
  func.func @transform_10(%arg0: i32, %arg1: i32) -> (i32, i32) {
    %c0_i32 = arith.constant 0 : i32
    %c0_i32_0 = arith.constant 0 : i32
    %c0_i32_1 = arith.constant 0 : i32
    return %c0_i32, %c0_i32_0 : i32, i32
  }
  func.func @transform_11(%arg0: i32, %arg1: i32) -> (i32, i32) {
    %c0_i32 = arith.constant 0 : i32
    %c0_i32_0 = arith.constant 0 : i32
    %c0_i32_1 = arith.constant 0 : i32
    return %c0_i32, %c0_i32_0 : i32, i32
  }
}

module attributes {stable_mosaic.version = 11 : i64} {
  func.func @mlp3_apply_kernel(%arg0: i32, %arg1: memref<12x128xf32, #tpu.memory_space<vmem>>, %arg2: memref<16x12xf32, #tpu.memory_space<vmem>>, %arg3: memref<16x1xf32, #tpu.memory_space<vmem>>, %arg4: memref<16x16xf32, #tpu.memory_space<vmem>>, %arg5: memref<16x1xf32, #tpu.memory_space<vmem>>, %arg6: memref<16x16xf32, #tpu.memory_space<vmem>>, %arg7: memref<16x1xf32, #tpu.memory_space<vmem>>, %arg8: memref<16x128xf32, #tpu.memory_space<vmem>>) attributes {dimension_semantics = [#tpu.dimension_semantics<parallel>], iteration_bounds = array<i64: 1>, scalar_prefetch = 0 : i64, scratch_operands = 0 : i64, tpu.core_type = #tpu.core_type<tc>, window_params = [{transform_indices = @transform_0, window_bounds = array<i64: 12, 128>}, {pipeline_mode = #tpu.pipeline_mode<synchronous>, transform_indices = @transform_1, window_bounds = array<i64: 16, 12>}, {pipeline_mode = #tpu.pipeline_mode<synchronous>, transform_indices = @transform_2, window_bounds = array<i64: 16, 1>}, {pipeline_mode = #tpu.pipeline_mode<synchronous>, transform_indices = @transform_3, window_bounds = array<i64: 16, 16>}, {pipeline_mode = #tpu.pipeline_mode<synchronous>, transform_indices = @transform_4, window_bounds = array<i64: 16, 1>}, {pipeline_mode = #tpu.pipeline_mode<synchronous>, transform_indices = @transform_5, window_bounds = array<i64: 16, 16>}, {pipeline_mode = #tpu.pipeline_mode<synchronous>, transform_indices = @transform_6, window_bounds = array<i64: 16, 1>}, {transform_indices = @transform_7, window_bounds = array<i64: 16, 128>}]} {
    %c0 = arith.constant 0 : index
    %c0_0 = arith.constant 0 : index
    %0 = vector.load %arg2[%c0, %c0_0] : memref<16x12xf32, #tpu.memory_space<vmem>>, vector<16x12xf32>
    %c0_1 = arith.constant 0 : index
    %c0_2 = arith.constant 0 : index
    %1 = vector.load %arg1[%c0_1, %c0_2] : memref<12x128xf32, #tpu.memory_space<vmem>>, vector<12x128xf32>
    %cst = arith.constant dense<0.000000e+00> : vector<16x128xf32>
    %2 = tpu.matmul %0, %1, %cst {dimension_numbers = #tpu.dot_dimension_numbers<[1], [0], [0], [1], [0, 0, 1, 1], [], []>} : vector<16x12xf32>, vector<12x128xf32>, vector<16x128xf32> -> vector<16x128xf32>
    %c0_3 = arith.constant 0 : index
    %c0_4 = arith.constant 0 : index
    %3 = vector.load %arg3[%c0_3, %c0_4] : memref<16x1xf32, #tpu.memory_space<vmem>>, vector<16x1xf32>
    %4 = vector.broadcast %3 : vector<16x1xf32> to vector<16x128xf32>
    %5 = arith.addf %2, %4 : vector<16x128xf32>
    %cst_5 = arith.constant 0.000000e+00 : f32
    %6 = vector.broadcast %cst_5 : f32 to vector<16x128xf32>
    %7 = arith.cmpf oge, %5, %6 : vector<16x128xf32>
    %cst_6 = arith.constant 1.000000e-01 : f32
    %8 = vector.broadcast %cst_6 : f32 to vector<16x128xf32>
    %9 = arith.mulf %8, %5 : vector<16x128xf32>
    %10 = arith.select %7, %5, %9 : vector<16x128xi1>, vector<16x128xf32>
    %c0_7 = arith.constant 0 : index
    %c0_8 = arith.constant 0 : index
    %11 = vector.load %arg4[%c0_7, %c0_8] : memref<16x16xf32, #tpu.memory_space<vmem>>, vector<16x16xf32>
    %cst_9 = arith.constant dense<0.000000e+00> : vector<16x128xf32>
    %12 = tpu.matmul %11, %10, %cst_9 {dimension_numbers = #tpu.dot_dimension_numbers<[1], [0], [0], [1], [0, 0, 1, 1], [], []>} : vector<16x16xf32>, vector<16x128xf32>, vector<16x128xf32> -> vector<16x128xf32>
    %c0_10 = arith.constant 0 : index
    %c0_11 = arith.constant 0 : index
    %13 = vector.load %arg5[%c0_10, %c0_11] : memref<16x1xf32, #tpu.memory_space<vmem>>, vector<16x1xf32>
    %14 = vector.broadcast %13 : vector<16x1xf32> to vector<16x128xf32>
    %15 = arith.addf %12, %14 : vector<16x128xf32>
    %cst_12 = arith.constant 0.000000e+00 : f32
    %16 = vector.broadcast %cst_12 : f32 to vector<16x128xf32>
    %17 = arith.cmpf oge, %15, %16 : vector<16x128xf32>
    %cst_13 = arith.constant 1.000000e-01 : f32
    %18 = vector.broadcast %cst_13 : f32 to vector<16x128xf32>
    %19 = arith.mulf %18, %15 : vector<16x128xf32>
    %20 = arith.select %17, %15, %19 : vector<16x128xi1>, vector<16x128xf32>
    %c0_14 = arith.constant 0 : index
    %c0_15 = arith.constant 0 : index
    %21 = vector.load %arg6[%c0_14, %c0_15] : memref<16x16xf32, #tpu.memory_space<vmem>>, vector<16x16xf32>
    %cst_16 = arith.constant dense<0.000000e+00> : vector<16x128xf32>
    %22 = tpu.matmul %21, %20, %cst_16 {dimension_numbers = #tpu.dot_dimension_numbers<[1], [0], [0], [1], [0, 0, 1, 1], [], []>} : vector<16x16xf32>, vector<16x128xf32>, vector<16x128xf32> -> vector<16x128xf32>
    %c0_17 = arith.constant 0 : index
    %c0_18 = arith.constant 0 : index
    %23 = vector.load %arg7[%c0_17, %c0_18] : memref<16x1xf32, #tpu.memory_space<vmem>>, vector<16x1xf32>
    %24 = vector.broadcast %23 : vector<16x1xf32> to vector<16x128xf32>
    %25 = arith.addf %22, %24 : vector<16x128xf32>
    %c0_19 = arith.constant 0 : index
    %c0_20 = arith.constant 0 : index
    %26 = vector.load %arg8[%c0_19, %c0_20] : memref<16x128xf32, #tpu.memory_space<vmem>>, vector<16x128xf32>
    tpu.vector_store %arg8[%c0_19, %c0_20], %25 {strides = array<i32>} : memref<16x128xf32, #tpu.memory_space<vmem>>, vector<16x128xf32>,
    return
  }
  func.func @transform_0(%arg0: i32) -> (i32, i32) {
    %c0_i32 = arith.constant 0 : i32
    %c0_i32_0 = arith.constant 0 : i32
    return %c0_i32, %arg0 : i32, i32
  }
  func.func @transform_1(%arg0: i32) -> (i32, i32) {
    %c0_i32 = arith.constant 0 : i32
    %c0_i32_0 = arith.constant 0 : i32
    %c0_i32_1 = arith.constant 0 : i32
    return %c0_i32, %c0_i32_0 : i32, i32
  }
  func.func @transform_2(%arg0: i32) -> (i32, i32) {
    %c0_i32 = arith.constant 0 : i32
    %c0_i32_0 = arith.constant 0 : i32
    %c0_i32_1 = arith.constant 0 : i32
    return %c0_i32, %c0_i32_0 : i32, i32
  }
  func.func @transform_3(%arg0: i32) -> (i32, i32) {
    %c0_i32 = arith.constant 0 : i32
    %c0_i32_0 = arith.constant 0 : i32
    %c0_i32_1 = arith.constant 0 : i32
    return %c0_i32, %c0_i32_0 : i32, i32
  }
  func.func @transform_4(%arg0: i32) -> (i32, i32) {
    %c0_i32 = arith.constant 0 : i32
    %c0_i32_0 = arith.constant 0 : i32
    %c0_i32_1 = arith.constant 0 : i32
    return %c0_i32, %c0_i32_0 : i32, i32
  }
  func.func @transform_5(%arg0: i32) -> (i32, i32) {
    %c0_i32 = arith.constant 0 : i32
    %c0_i32_0 = arith.constant 0 : i32
    %c0_i32_1 = arith.constant 0 : i32
    return %c0_i32, %c0_i32_0 : i32, i32
  }
  func.func @transform_6(%arg0: i32) -> (i32, i32) {
    %c0_i32 = arith.constant 0 : i32
    %c0_i32_0 = arith.constant 0 : i32
    %c0_i32_1 = arith.constant 0 : i32
    return %c0_i32, %c0_i32_0 : i32, i32
  }
  func.func @transform_7(%arg0: i32) -> (i32, i32) {
    %c0_i32 = arith.constant 0 : i32
    %c0_i32_0 = arith.constant 0 : i32
    return %c0_i32, %arg0 : i32, i32
  }
}

module attributes {stable_mosaic.version = 11 : i64} {
  func.func @scatter_mean_kernel(%arg0: i32, %arg1: i32, %arg2: memref<128x1xi32, #tpu.memory_space<vmem>>, %arg3: memref<17x128xf32, #tpu.memory_space<vmem>>, %arg4: memref<17x128xf32, #tpu.memory_space<vmem>>) attributes {dimension_semantics = [#tpu.dimension_semantics<parallel>, #tpu.dimension_semantics<arbitrary>], iteration_bounds = array<i64: 1, 1>, scalar_prefetch = 0 : i64, scratch_operands = 0 : i64, tpu.core_type = #tpu.core_type<tc>, window_params = [{transform_indices = @transform_0, window_bounds = array<i64: 128, 1>}, {transform_indices = @transform_1, window_bounds = array<i64: 17, 128>}, {transform_indices = @transform_2, window_bounds = array<i64: 17, 128>}]} {
    %c0_i32 = arith.constant 0 : i32
    %0 = arith.cmpi eq, %arg1, %c0_i32 : i32
    %1 = arith.extui %0 : i1 to i32
    %c0_i32_0 = arith.constant 0 : i32
    %2 = arith.cmpi ne, %1, %c0_i32_0 : i32
    scf.if %2 {
      %cst_10 = arith.constant 0.000000e+00 : f32
      %20 = vector.broadcast %cst_10 : f32 to vector<17x128xf32>
      %c0_11 = arith.constant 0 : index
      %c0_12 = arith.constant 0 : index
      %21 = vector.load %arg4[%c0_11, %c0_12] : memref<17x128xf32, #tpu.memory_space<vmem>>, vector<17x128xf32>
      tpu.vector_store %arg4[%c0_11, %c0_12], %20 {strides = array<i32>} : memref<17x128xf32, #tpu.memory_space<vmem>>, vector<17x128xf32>,
    } else {
    }
    %c128_i32 = arith.constant 128 : i32
    %3 = arith.muli %arg0, %c128_i32 : i32
    %4 = tpu.iota {dimensions = array<i32: 1>} : vector<128x128xi32>
    %5 = vector.broadcast %3 : i32 to vector<128x128xi32>
    %6 = arith.addi %5, %4 : vector<128x128xi32>
    %c0 = arith.constant 0 : index
    %c0_1 = arith.constant 0 : index
    %7 = vector.load %arg2[%c0, %c0_1] : memref<128x1xi32, #tpu.memory_space<vmem>>, vector<128x1xi32>
    %8 = vector.broadcast %7 : vector<128x1xi32> to vector<128x128xi32>
    %9 = arith.cmpi eq, %8, %6 : vector<128x128xi32>
    %10 = arith.extui %9 : vector<128x128xi1> to vector<128x128xi32>
    %11 = arith.sitofp %10 : vector<128x128xi32> to vector<128x128xf32>
    %c0_2 = arith.constant 0 : index
    %c0_3 = arith.constant 0 : index
    %12 = vector.load %arg4[%c0_2, %c0_3] : memref<17x128xf32, #tpu.memory_space<vmem>>, vector<17x128xf32>
    %c0_4 = arith.constant 0 : index
    %c0_5 = arith.constant 0 : index
    %13 = vector.load %arg3[%c0_4, %c0_5] : memref<17x128xf32, #tpu.memory_space<vmem>>, vector<17x128xf32>
    %cst = arith.constant dense<0.000000e+00> : vector<17x128xf32>
    %14 = tpu.matmul %13, %11, %cst {dimension_numbers = #tpu.dot_dimension_numbers<[1], [0], [0], [1], [0, 0, 1, 1], [], []>} : vector<17x128xf32>, vector<128x128xf32>, vector<17x128xf32> -> vector<17x128xf32>
    %15 = arith.addf %12, %14 : vector<17x128xf32>
    %c0_6 = arith.constant 0 : index
    %c0_7 = arith.constant 0 : index
    %16 = vector.load %arg4[%c0_6, %c0_7] : memref<17x128xf32, #tpu.memory_space<vmem>>, vector<17x128xf32>
    tpu.vector_store %arg4[%c0_6, %c0_7], %15 {strides = array<i32>} : memref<17x128xf32, #tpu.memory_space<vmem>>, vector<17x128xf32>,
    %c0_i32_8 = arith.constant 0 : i32
    %17 = arith.cmpi eq, %arg1, %c0_i32_8 : i32
    %18 = arith.extui %17 : i1 to i32
    %c0_i32_9 = arith.constant 0 : i32
    %19 = arith.cmpi ne, %18, %c0_i32_9 : i32
    scf.if %19 {
      %c0_10 = arith.constant 0 : index
      %c0_11 = arith.constant 0 : index
      %20 = vector.load %arg4[%c0_10, %c0_11] : memref<17x128xf32, #tpu.memory_space<vmem>>, vector<17x128xf32>
      %21 = vector.extract_strided_slice %20 {offsets = [16, 0], sizes = [1, 128], strides = [1, 1]} : vector<17x128xf32> to vector<1x128xf32>
      %cst_12 = arith.constant 1.000000e+00 : f32
      %22 = vector.broadcast %cst_12 : f32 to vector<1x128xf32>
      %23 = arith.maximumf %21, %22 : vector<1x128xf32>
      %24 = vector.broadcast %23 : vector<1x128xf32> to vector<17x128xf32>
      %25 = arith.divf %20, %24 : vector<17x128xf32>
      %c0_13 = arith.constant 0 : index
      %c0_14 = arith.constant 0 : index
      %26 = vector.load %arg4[%c0_13, %c0_14] : memref<17x128xf32, #tpu.memory_space<vmem>>, vector<17x128xf32>
      tpu.vector_store %arg4[%c0_13, %c0_14], %25 {strides = array<i32>} : memref<17x128xf32, #tpu.memory_space<vmem>>, vector<17x128xf32>,
    } else {
    }
    return
  }
  func.func @transform_0(%arg0: i32, %arg1: i32) -> (i32, i32) {
    %c0_i32 = arith.constant 0 : i32
    %c0_i32_0 = arith.constant 0 : i32
    return %arg1, %c0_i32 : i32, i32
  }
  func.func @transform_1(%arg0: i32, %arg1: i32) -> (i32, i32) {
    %c0_i32 = arith.constant 0 : i32
    %c0_i32_0 = arith.constant 0 : i32
    return %c0_i32, %arg1 : i32, i32
  }
  func.func @transform_2(%arg0: i32, %arg1: i32) -> (i32, i32) {
    %c0_i32 = arith.constant 0 : i32
    %c0_i32_0 = arith.constant 0 : i32
    return %c0_i32, %arg0 : i32, i32
  }
}

module attributes {stable_mosaic.version = 11 : i64} {
  func.func @mlp3_stats_kernel(%arg0: i32, %arg1: i32, %arg2: memref<24x128xf32, #tpu.memory_space<vmem>>, %arg3: memref<24x1xf32, #tpu.memory_space<vmem>>, %arg4: memref<24x1xf32, #tpu.memory_space<vmem>>, %arg5: memref<16x24xf32, #tpu.memory_space<vmem>>, %arg6: memref<16x1xf32, #tpu.memory_space<vmem>>, %arg7: memref<16x1xf32, #tpu.memory_space<vmem>>, %arg8: memref<16x1xf32, #tpu.memory_space<vmem>>, %arg9: memref<16x16xf32, #tpu.memory_space<vmem>>, %arg10: memref<16x1xf32, #tpu.memory_space<vmem>>, %arg11: memref<24x2xf32, #tpu.memory_space<vmem>>, %arg12: memref<16x2xf32, #tpu.memory_space<vmem>>, %arg13: memref<16x2xf32, #tpu.memory_space<vmem>>) attributes {dimension_semantics = [#tpu.dimension_semantics<arbitrary>, #tpu.dimension_semantics<arbitrary>], iteration_bounds = array<i64: 3, 1>, scalar_prefetch = 0 : i64, scratch_operands = 0 : i64, tpu.core_type = #tpu.core_type<tc>, window_params = [{transform_indices = @transform_0, window_bounds = array<i64: 24, 128>}, {pipeline_mode = #tpu.pipeline_mode<synchronous>, transform_indices = @transform_1, window_bounds = array<i64: 24, 1>}, {pipeline_mode = #tpu.pipeline_mode<synchronous>, transform_indices = @transform_2, window_bounds = array<i64: 24, 1>}, {pipeline_mode = #tpu.pipeline_mode<synchronous>, transform_indices = @transform_3, window_bounds = array<i64: 16, 24>}, {pipeline_mode = #tpu.pipeline_mode<synchronous>, transform_indices = @transform_4, window_bounds = array<i64: 16, 1>}, {pipeline_mode = #tpu.pipeline_mode<synchronous>, transform_indices = @transform_5, window_bounds = array<i64: 16, 1>}, {pipeline_mode = #tpu.pipeline_mode<synchronous>, transform_indices = @transform_6, window_bounds = array<i64: 16, 1>}, {pipeline_mode = #tpu.pipeline_mode<synchronous>, transform_indices = @transform_7, window_bounds = array<i64: 16, 16>}, {pipeline_mode = #tpu.pipeline_mode<synchronous>, transform_indices = @transform_8, window_bounds = array<i64: 16, 1>}, {pipeline_mode = #tpu.pipeline_mode<synchronous>, transform_indices = @transform_9, window_bounds = array<i64: 24, 2>}, {pipeline_mode = #tpu.pipeline_mode<synchronous>, transform_indices = @transform_10, window_bounds = array<i64: 16, 2>}, {pipeline_mode = #tpu.pipeline_mode<synchronous>, transform_indices = @transform_11, window_bounds = array<i64: 16, 2>}]} {
    %c0_i32 = arith.constant 0 : i32
    %0 = arith.cmpi eq, %arg0, %c0_i32 : i32
    %c0_i32_0 = arith.constant 0 : i32
    %1 = arith.cmpi eq, %arg1, %c0_i32_0 : i32
    %2 = arith.andi %0, %1 : i1
    %3 = arith.extui %2 : i1 to i32
    %c0_i32_1 = arith.constant 0 : i32
    %4 = arith.cmpi ne, %3, %c0_i32_1 : i32
    scf.if %4 {
      %cst = arith.constant 0.000000e+00 : f32
      %23 = vector.broadcast %cst : f32 to vector<24x2xf32>
      %c0_7 = arith.constant 0 : index
      %c0_8 = arith.constant 0 : index
      %24 = vector.load %arg11[%c0_7, %c0_8] : memref<24x2xf32, #tpu.memory_space<vmem>>, vector<24x2xf32>
      tpu.vector_store %arg11[%c0_7, %c0_8], %23 {strides = array<i32>} : memref<24x2xf32, #tpu.memory_space<vmem>>, vector<24x2xf32>,
      %cst_9 = arith.constant 0.000000e+00 : f32
      %25 = vector.broadcast %cst_9 : f32 to vector<16x2xf32>
      %c0_10 = arith.constant 0 : index
      %c0_11 = arith.constant 0 : index
      %26 = vector.load %arg12[%c0_10, %c0_11] : memref<16x2xf32, #tpu.memory_space<vmem>>, vector<16x2xf32>
      tpu.vector_store %arg12[%c0_10, %c0_11], %25 {strides = array<i32>} : memref<16x2xf32, #tpu.memory_space<vmem>>, vector<16x2xf32>,
      %cst_12 = arith.constant 0.000000e+00 : f32
      %27 = vector.broadcast %cst_12 : f32 to vector<16x2xf32>
      %c0_13 = arith.constant 0 : index
      %c0_14 = arith.constant 0 : index
      %28 = vector.load %arg13[%c0_13, %c0_14] : memref<16x2xf32, #tpu.memory_space<vmem>>, vector<16x2xf32>
      tpu.vector_store %arg13[%c0_13, %c0_14], %27 {strides = array<i32>} : memref<16x2xf32, #tpu.memory_space<vmem>>, vector<16x2xf32>,
    } else {
    }
    %c0 = arith.constant 0 : index
    %c0_2 = arith.constant 0 : index
    %5 = vector.load %arg2[%c0, %c0_2] : memref<24x128xf32, #tpu.memory_space<vmem>>, vector<24x128xf32>
    %c128_i32 = arith.constant 128 : i32
    %6 = arith.muli %arg1, %c128_i32 : i32
    %7 = tpu.iota {dimensions = array<i32: 1>} : vector<1x128xi32>
    %8 = vector.broadcast %6 : i32 to vector<1x128xi32>
    %9 = arith.addi %8, %7 : vector<1x128xi32>
    %c8_i32 = arith.constant 8 : i32
    %10 = vector.broadcast %c8_i32 : i32 to vector<1x128xi32>
    %11 = arith.cmpi slt, %9, %10 : vector<1x128xi32>
    %12 = arith.extui %11 : vector<1x128xi1> to vector<1x128xi32>
    %13 = arith.sitofp %12 : vector<1x128xi32> to vector<1x128xf32>
    %c0_i32_3 = arith.constant 0 : i32
    %14 = arith.cmpi eq, %arg0, %c0_i32_3 : i32
    %15 = arith.extui %14 : i1 to i32
    %c0_i32_4 = arith.constant 0 : i32
    %16 = arith.cmpi ne, %15, %c0_i32_4 : i32
    scf.if %16 {
      %cst = arith.constant dense<0.000000e+00> : vector<24xf32>
      %23 = vector.multi_reduction <add>, %5, %cst [1] : vector<24x128xf32> to vector<24xf32>
      %24 = vector.shape_cast %23 : vector<24xf32> to vector<24x1xf32>
      %25 = arith.mulf %5, %5 : vector<24x128xf32>
      %cst_7 = arith.constant dense<0.000000e+00> : vector<24xf32>
      %26 = vector.multi_reduction <add>, %25, %cst_7 [1] : vector<24x128xf32> to vector<24xf32>
      %27 = vector.shape_cast %26 : vector<24xf32> to vector<24x1xf32>
      %c0_8 = arith.constant 0 : index
      %c0_9 = arith.constant 0 : index
      %28 = vector.load %arg11[%c0_8, %c0_9] : memref<24x2xf32, #tpu.memory_space<vmem>>, vector<24x2xf32>
      %29 = tpu.concatenate %24, %27 in 1 : vector<24x1xf32>, vector<24x1xf32> -> vector<24x2xf32>
      %30 = arith.addf %28, %29 : vector<24x2xf32>
      %c0_10 = arith.constant 0 : index
      %c0_11 = arith.constant 0 : index
      %31 = vector.load %arg11[%c0_10, %c0_11] : memref<24x2xf32, #tpu.memory_space<vmem>>, vector<24x2xf32>
      tpu.vector_store %arg11[%c0_10, %c0_11], %30 {strides = array<i32>} : memref<24x2xf32, #tpu.memory_space<vmem>>, vector<24x2xf32>,
    } else {
    }
    %c1_i32 = arith.constant 1 : i32
    %17 = arith.cmpi eq, %arg0, %c1_i32 : i32
    %18 = arith.extui %17 : i1 to i32
    %c0_i32_5 = arith.constant 0 : i32
    %19 = arith.cmpi ne, %18, %c0_i32_5 : i32
    scf.if %19 {
      %c0_7 = arith.constant 0 : index
      %c0_8 = arith.constant 0 : index
      %23 = vector.load %arg11[%c0_7, %c0_8] : memref<24x2xf32, #tpu.memory_space<vmem>>, vector<24x1xf32>
      %cst = arith.constant 1.250000e-01 : f32
      %24 = vector.broadcast %cst : f32 to vector<24x1xf32>
      %25 = arith.mulf %23, %24 : vector<24x1xf32>
      %c0_9 = arith.constant 0 : index
      %c1 = arith.constant 1 : index
      %26 = vector.load %arg11[%c0_9, %c1] : memref<24x2xf32, #tpu.memory_space<vmem>>, vector<24x1xf32>
      %cst_10 = arith.constant 1.250000e-01 : f32
      %27 = vector.broadcast %cst_10 : f32 to vector<24x1xf32>
      %28 = arith.mulf %26, %27 : vector<24x1xf32>
      %29 = arith.mulf %25, %25 : vector<24x1xf32>
      %30 = arith.subf %28, %29 : vector<24x1xf32>
      %cst_11 = arith.constant 9.99999974E-6 : f32
      %31 = vector.broadcast %cst_11 : f32 to vector<24x1xf32>
      %32 = arith.addf %30, %31 : vector<24x1xf32>
      %33 = math.rsqrt %32 : vector<24x1xf32>
      %c0_12 = arith.constant 0 : index
      %c0_13 = arith.constant 0 : index
      %34 = vector.load %arg3[%c0_12, %c0_13] : memref<24x1xf32, #tpu.memory_space<vmem>>, vector<24x1xf32>
      %35 = arith.mulf %33, %34 : vector<24x1xf32>
      %36 = vector.broadcast %25 : vector<24x1xf32> to vector<24x128xf32>
      %37 = arith.subf %5, %36 : vector<24x128xf32>
      %38 = vector.broadcast %35 : vector<24x1xf32> to vector<24x128xf32>
      %39 = arith.mulf %37, %38 : vector<24x128xf32>
      %c0_14 = arith.constant 0 : index
      %c0_15 = arith.constant 0 : index
      %40 = vector.load %arg4[%c0_14, %c0_15] : memref<24x1xf32, #tpu.memory_space<vmem>>, vector<24x1xf32>
      %41 = vector.broadcast %40 : vector<24x1xf32> to vector<24x128xf32>
      %42 = arith.addf %39, %41 : vector<24x128xf32>
      %c0_16 = arith.constant 0 : index
      %c0_17 = arith.constant 0 : index
      %43 = vector.load %arg5[%c0_16, %c0_17] : memref<16x24xf32, #tpu.memory_space<vmem>>, vector<16x24xf32>
      %cst_18 = arith.constant dense<0.000000e+00> : vector<16x128xf32>
      %44 = tpu.matmul %43, %42, %cst_18 {dimension_numbers = #tpu.dot_dimension_numbers<[1], [0], [0], [1], [0, 0, 1, 1], [], []>} : vector<16x24xf32>, vector<24x128xf32>, vector<16x128xf32> -> vector<16x128xf32>
      %c0_19 = arith.constant 0 : index
      %c0_20 = arith.constant 0 : index
      %45 = vector.load %arg6[%c0_19, %c0_20] : memref<16x1xf32, #tpu.memory_space<vmem>>, vector<16x1xf32>
      %46 = vector.broadcast %45 : vector<16x1xf32> to vector<16x128xf32>
      %47 = arith.addf %44, %46 : vector<16x128xf32>
      %cst_21 = arith.constant 0.000000e+00 : f32
      %48 = vector.broadcast %cst_21 : f32 to vector<16x128xf32>
      %49 = arith.cmpf oge, %47, %48 : vector<16x128xf32>
      %cst_22 = arith.constant 1.000000e-01 : f32
      %50 = vector.broadcast %cst_22 : f32 to vector<16x128xf32>
      %51 = arith.mulf %50, %47 : vector<16x128xf32>
      %52 = arith.select %49, %47, %51 : vector<16x128xi1>, vector<16x128xf32>
      %53 = vector.broadcast %13 : vector<1x128xf32> to vector<16x128xf32>
      %54 = arith.mulf %52, %53 : vector<16x128xf32>
      %cst_23 = arith.constant dense<0.000000e+00> : vector<16xf32>
      %55 = vector.multi_reduction <add>, %54, %cst_23 [1] : vector<16x128xf32> to vector<16xf32>
      %56 = vector.shape_cast %55 : vector<16xf32> to vector<16x1xf32>
      %57 = arith.mulf %54, %54 : vector<16x128xf32>
      %cst_24 = arith.constant dense<0.000000e+00> : vector<16xf32>
      %58 = vector.multi_reduction <add>, %57, %cst_24 [1] : vector<16x128xf32> to vector<16xf32>
      %59 = vector.shape_cast %58 : vector<16xf32> to vector<16x1xf32>
      %c0_25 = arith.constant 0 : index
      %c0_26 = arith.constant 0 : index
      %60 = vector.load %arg12[%c0_25, %c0_26] : memref<16x2xf32, #tpu.memory_space<vmem>>, vector<16x2xf32>
      %61 = tpu.concatenate %56, %59 in 1 : vector<16x1xf32>, vector<16x1xf32> -> vector<16x2xf32>
      %62 = arith.addf %60, %61 : vector<16x2xf32>
      %c0_27 = arith.constant 0 : index
      %c0_28 = arith.constant 0 : index
      %63 = vector.load %arg12[%c0_27, %c0_28] : memref<16x2xf32, #tpu.memory_space<vmem>>, vector<16x2xf32>
      tpu.vector_store %arg12[%c0_27, %c0_28], %62 {strides = array<i32>} : memref<16x2xf32, #tpu.memory_space<vmem>>, vector<16x2xf32>,
    } else {
    }
    %c2_i32 = arith.constant 2 : i32
    %20 = arith.cmpi eq, %arg0, %c2_i32 : i32
    %21 = arith.extui %20 : i1 to i32
    %c0_i32_6 = arith.constant 0 : i32
    %22 = arith.cmpi ne, %21, %c0_i32_6 : i32
    scf.if %22 {
      %c0_7 = arith.constant 0 : index
      %c0_8 = arith.constant 0 : index
      %23 = vector.load %arg11[%c0_7, %c0_8] : memref<24x2xf32, #tpu.memory_space<vmem>>, vector<24x1xf32>
      %cst = arith.constant 1.250000e-01 : f32
      %24 = vector.broadcast %cst : f32 to vector<24x1xf32>
      %25 = arith.mulf %23, %24 : vector<24x1xf32>
      %c0_9 = arith.constant 0 : index
      %c1 = arith.constant 1 : index
      %26 = vector.load %arg11[%c0_9, %c1] : memref<24x2xf32, #tpu.memory_space<vmem>>, vector<24x1xf32>
      %cst_10 = arith.constant 1.250000e-01 : f32
      %27 = vector.broadcast %cst_10 : f32 to vector<24x1xf32>
      %28 = arith.mulf %26, %27 : vector<24x1xf32>
      %29 = arith.mulf %25, %25 : vector<24x1xf32>
      %30 = arith.subf %28, %29 : vector<24x1xf32>
      %cst_11 = arith.constant 9.99999974E-6 : f32
      %31 = vector.broadcast %cst_11 : f32 to vector<24x1xf32>
      %32 = arith.addf %30, %31 : vector<24x1xf32>
      %33 = math.rsqrt %32 : vector<24x1xf32>
      %c0_12 = arith.constant 0 : index
      %c0_13 = arith.constant 0 : index
      %34 = vector.load %arg3[%c0_12, %c0_13] : memref<24x1xf32, #tpu.memory_space<vmem>>, vector<24x1xf32>
      %35 = arith.mulf %33, %34 : vector<24x1xf32>
      %36 = vector.broadcast %25 : vector<24x1xf32> to vector<24x128xf32>
      %37 = arith.subf %5, %36 : vector<24x128xf32>
      %38 = vector.broadcast %35 : vector<24x1xf32> to vector<24x128xf32>
      %39 = arith.mulf %37, %38 : vector<24x128xf32>
      %c0_14 = arith.constant 0 : index
      %c0_15 = arith.constant 0 : index
      %40 = vector.load %arg4[%c0_14, %c0_15] : memref<24x1xf32, #tpu.memory_space<vmem>>, vector<24x1xf32>
      %41 = vector.broadcast %40 : vector<24x1xf32> to vector<24x128xf32>
      %42 = arith.addf %39, %41 : vector<24x128xf32>
      %c0_16 = arith.constant 0 : index
      %c0_17 = arith.constant 0 : index
      %43 = vector.load %arg5[%c0_16, %c0_17] : memref<16x24xf32, #tpu.memory_space<vmem>>, vector<16x24xf32>
      %cst_18 = arith.constant dense<0.000000e+00> : vector<16x128xf32>
      %44 = tpu.matmul %43, %42, %cst_18 {dimension_numbers = #tpu.dot_dimension_numbers<[1], [0], [0], [1], [0, 0, 1, 1], [], []>} : vector<16x24xf32>, vector<24x128xf32>, vector<16x128xf32> -> vector<16x128xf32>
      %c0_19 = arith.constant 0 : index
      %c0_20 = arith.constant 0 : index
      %45 = vector.load %arg6[%c0_19, %c0_20] : memref<16x1xf32, #tpu.memory_space<vmem>>, vector<16x1xf32>
      %46 = vector.broadcast %45 : vector<16x1xf32> to vector<16x128xf32>
      %47 = arith.addf %44, %46 : vector<16x128xf32>
      %cst_21 = arith.constant 0.000000e+00 : f32
      %48 = vector.broadcast %cst_21 : f32 to vector<16x128xf32>
      %49 = arith.cmpf oge, %47, %48 : vector<16x128xf32>
      %cst_22 = arith.constant 1.000000e-01 : f32
      %50 = vector.broadcast %cst_22 : f32 to vector<16x128xf32>
      %51 = arith.mulf %50, %47 : vector<16x128xf32>
      %52 = arith.select %49, %47, %51 : vector<16x128xi1>, vector<16x128xf32>
      %c0_23 = arith.constant 0 : index
      %c0_24 = arith.constant 0 : index
      %53 = vector.load %arg12[%c0_23, %c0_24] : memref<16x2xf32, #tpu.memory_space<vmem>>, vector<16x1xf32>
      %cst_25 = arith.constant 1.250000e-01 : f32
      %54 = vector.broadcast %cst_25 : f32 to vector<16x1xf32>
      %55 = arith.mulf %53, %54 : vector<16x1xf32>
      %c0_26 = arith.constant 0 : index
      %c1_27 = arith.constant 1 : index
      %56 = vector.load %arg12[%c0_26, %c1_27] : memref<16x2xf32, #tpu.memory_space<vmem>>, vector<16x1xf32>
      %cst_28 = arith.constant 1.250000e-01 : f32
      %57 = vector.broadcast %cst_28 : f32 to vector<16x1xf32>
      %58 = arith.mulf %56, %57 : vector<16x1xf32>
      %59 = arith.mulf %55, %55 : vector<16x1xf32>
      %60 = arith.subf %58, %59 : vector<16x1xf32>
      %cst_29 = arith.constant 9.99999974E-6 : f32
      %61 = vector.broadcast %cst_29 : f32 to vector<16x1xf32>
      %62 = arith.addf %60, %61 : vector<16x1xf32>
      %63 = math.rsqrt %62 : vector<16x1xf32>
      %c0_30 = arith.constant 0 : index
      %c0_31 = arith.constant 0 : index
      %64 = vector.load %arg7[%c0_30, %c0_31] : memref<16x1xf32, #tpu.memory_space<vmem>>, vector<16x1xf32>
      %65 = arith.mulf %63, %64 : vector<16x1xf32>
      %66 = vector.broadcast %55 : vector<16x1xf32> to vector<16x128xf32>
      %67 = arith.subf %52, %66 : vector<16x128xf32>
      %68 = vector.broadcast %65 : vector<16x1xf32> to vector<16x128xf32>
      %69 = arith.mulf %67, %68 : vector<16x128xf32>
      %c0_32 = arith.constant 0 : index
      %c0_33 = arith.constant 0 : index
      %70 = vector.load %arg8[%c0_32, %c0_33] : memref<16x1xf32, #tpu.memory_space<vmem>>, vector<16x1xf32>
      %71 = vector.broadcast %70 : vector<16x1xf32> to vector<16x128xf32>
      %72 = arith.addf %69, %71 : vector<16x128xf32>
      %c0_34 = arith.constant 0 : index
      %c0_35 = arith.constant 0 : index
      %73 = vector.load %arg9[%c0_34, %c0_35] : memref<16x16xf32, #tpu.memory_space<vmem>>, vector<16x16xf32>
      %cst_36 = arith.constant dense<0.000000e+00> : vector<16x128xf32>
      %74 = tpu.matmul %73, %72, %cst_36 {dimension_numbers = #tpu.dot_dimension_numbers<[1], [0], [0], [1], [0, 0, 1, 1], [], []>} : vector<16x16xf32>, vector<16x128xf32>, vector<16x128xf32> -> vector<16x128xf32>
      %c0_37 = arith.constant 0 : index
      %c0_38 = arith.constant 0 : index
      %75 = vector.load %arg10[%c0_37, %c0_38] : memref<16x1xf32, #tpu.memory_space<vmem>>, vector<16x1xf32>
      %76 = vector.broadcast %75 : vector<16x1xf32> to vector<16x128xf32>
      %77 = arith.addf %74, %76 : vector<16x128xf32>
      %cst_39 = arith.constant 0.000000e+00 : f32
      %78 = vector.broadcast %cst_39 : f32 to vector<16x128xf32>
      %79 = arith.cmpf oge, %77, %78 : vector<16x128xf32>
      %cst_40 = arith.constant 1.000000e-01 : f32
      %80 = vector.broadcast %cst_40 : f32 to vector<16x128xf32>
      %81 = arith.mulf %80, %77 : vector<16x128xf32>
      %82 = arith.select %79, %77, %81 : vector<16x128xi1>, vector<16x128xf32>
      %83 = vector.broadcast %13 : vector<1x128xf32> to vector<16x128xf32>
      %84 = arith.mulf %82, %83 : vector<16x128xf32>
      %cst_41 = arith.constant dense<0.000000e+00> : vector<16xf32>
      %85 = vector.multi_reduction <add>, %84, %cst_41 [1] : vector<16x128xf32> to vector<16xf32>
      %86 = vector.shape_cast %85 : vector<16xf32> to vector<16x1xf32>
      %87 = arith.mulf %84, %84 : vector<16x128xf32>
      %cst_42 = arith.constant dense<0.000000e+00> : vector<16xf32>
      %88 = vector.multi_reduction <add>, %87, %cst_42 [1] : vector<16x128xf32> to vector<16xf32>
      %89 = vector.shape_cast %88 : vector<16xf32> to vector<16x1xf32>
      %c0_43 = arith.constant 0 : index
      %c0_44 = arith.constant 0 : index
      %90 = vector.load %arg13[%c0_43, %c0_44] : memref<16x2xf32, #tpu.memory_space<vmem>>, vector<16x2xf32>
      %91 = tpu.concatenate %86, %89 in 1 : vector<16x1xf32>, vector<16x1xf32> -> vector<16x2xf32>
      %92 = arith.addf %90, %91 : vector<16x2xf32>
      %c0_45 = arith.constant 0 : index
      %c0_46 = arith.constant 0 : index
      %93 = vector.load %arg13[%c0_45, %c0_46] : memref<16x2xf32, #tpu.memory_space<vmem>>, vector<16x2xf32>
      tpu.vector_store %arg13[%c0_45, %c0_46], %92 {strides = array<i32>} : memref<16x2xf32, #tpu.memory_space<vmem>>, vector<16x2xf32>,
    } else {
    }
    return
  }
  func.func @transform_0(%arg0: i32, %arg1: i32) -> (i32, i32) {
    %c0_i32 = arith.constant 0 : i32
    %c0_i32_0 = arith.constant 0 : i32
    return %c0_i32, %arg1 : i32, i32
  }
  func.func @transform_1(%arg0: i32, %arg1: i32) -> (i32, i32) {
    %c0_i32 = arith.constant 0 : i32
    %c0_i32_0 = arith.constant 0 : i32
    %c0_i32_1 = arith.constant 0 : i32
    return %c0_i32, %c0_i32_0 : i32, i32
  }
  func.func @transform_2(%arg0: i32, %arg1: i32) -> (i32, i32) {
    %c0_i32 = arith.constant 0 : i32
    %c0_i32_0 = arith.constant 0 : i32
    %c0_i32_1 = arith.constant 0 : i32
    return %c0_i32, %c0_i32_0 : i32, i32
  }
  func.func @transform_3(%arg0: i32, %arg1: i32) -> (i32, i32) {
    %c0_i32 = arith.constant 0 : i32
    %c0_i32_0 = arith.constant 0 : i32
    %c0_i32_1 = arith.constant 0 : i32
    return %c0_i32, %c0_i32_0 : i32, i32
  }
  func.func @transform_4(%arg0: i32, %arg1: i32) -> (i32, i32) {
    %c0_i32 = arith.constant 0 : i32
    %c0_i32_0 = arith.constant 0 : i32
    %c0_i32_1 = arith.constant 0 : i32
    return %c0_i32, %c0_i32_0 : i32, i32
  }
  func.func @transform_5(%arg0: i32, %arg1: i32) -> (i32, i32) {
    %c0_i32 = arith.constant 0 : i32
    %c0_i32_0 = arith.constant 0 : i32
    %c0_i32_1 = arith.constant 0 : i32
    return %c0_i32, %c0_i32_0 : i32, i32
  }
  func.func @transform_6(%arg0: i32, %arg1: i32) -> (i32, i32) {
    %c0_i32 = arith.constant 0 : i32
    %c0_i32_0 = arith.constant 0 : i32
    %c0_i32_1 = arith.constant 0 : i32
    return %c0_i32, %c0_i32_0 : i32, i32
  }
  func.func @transform_7(%arg0: i32, %arg1: i32) -> (i32, i32) {
    %c0_i32 = arith.constant 0 : i32
    %c0_i32_0 = arith.constant 0 : i32
    %c0_i32_1 = arith.constant 0 : i32
    return %c0_i32, %c0_i32_0 : i32, i32
  }
  func.func @transform_8(%arg0: i32, %arg1: i32) -> (i32, i32) {
    %c0_i32 = arith.constant 0 : i32
    %c0_i32_0 = arith.constant 0 : i32
    %c0_i32_1 = arith.constant 0 : i32
    return %c0_i32, %c0_i32_0 : i32, i32
  }
  func.func @transform_9(%arg0: i32, %arg1: i32) -> (i32, i32) {
    %c0_i32 = arith.constant 0 : i32
    %c0_i32_0 = arith.constant 0 : i32
    %c0_i32_1 = arith.constant 0 : i32
    return %c0_i32, %c0_i32_0 : i32, i32
  }
  func.func @transform_10(%arg0: i32, %arg1: i32) -> (i32, i32) {
    %c0_i32 = arith.constant 0 : i32
    %c0_i32_0 = arith.constant 0 : i32
    %c0_i32_1 = arith.constant 0 : i32
    return %c0_i32, %c0_i32_0 : i32, i32
  }
  func.func @transform_11(%arg0: i32, %arg1: i32) -> (i32, i32) {
    %c0_i32 = arith.constant 0 : i32
    %c0_i32_0 = arith.constant 0 : i32
    %c0_i32_1 = arith.constant 0 : i32
    return %c0_i32, %c0_i32_0 : i32, i32
  }
}

module attributes {stable_mosaic.version = 11 : i64} {
  func.func @mlp3_apply_kernel(%arg0: i32, %arg1: memref<24x128xf32, #tpu.memory_space<vmem>>, %arg2: memref<16x24xf32, #tpu.memory_space<vmem>>, %arg3: memref<16x1xf32, #tpu.memory_space<vmem>>, %arg4: memref<16x16xf32, #tpu.memory_space<vmem>>, %arg5: memref<16x1xf32, #tpu.memory_space<vmem>>, %arg6: memref<16x16xf32, #tpu.memory_space<vmem>>, %arg7: memref<16x1xf32, #tpu.memory_space<vmem>>, %arg8: memref<16x128xf32, #tpu.memory_space<vmem>>) attributes {dimension_semantics = [#tpu.dimension_semantics<parallel>], iteration_bounds = array<i64: 1>, scalar_prefetch = 0 : i64, scratch_operands = 0 : i64, tpu.core_type = #tpu.core_type<tc>, window_params = [{transform_indices = @transform_0, window_bounds = array<i64: 24, 128>}, {pipeline_mode = #tpu.pipeline_mode<synchronous>, transform_indices = @transform_1, window_bounds = array<i64: 16, 24>}, {pipeline_mode = #tpu.pipeline_mode<synchronous>, transform_indices = @transform_2, window_bounds = array<i64: 16, 1>}, {pipeline_mode = #tpu.pipeline_mode<synchronous>, transform_indices = @transform_3, window_bounds = array<i64: 16, 16>}, {pipeline_mode = #tpu.pipeline_mode<synchronous>, transform_indices = @transform_4, window_bounds = array<i64: 16, 1>}, {pipeline_mode = #tpu.pipeline_mode<synchronous>, transform_indices = @transform_5, window_bounds = array<i64: 16, 16>}, {pipeline_mode = #tpu.pipeline_mode<synchronous>, transform_indices = @transform_6, window_bounds = array<i64: 16, 1>}, {transform_indices = @transform_7, window_bounds = array<i64: 16, 128>}]} {
    %c0 = arith.constant 0 : index
    %c0_0 = arith.constant 0 : index
    %0 = vector.load %arg2[%c0, %c0_0] : memref<16x24xf32, #tpu.memory_space<vmem>>, vector<16x24xf32>
    %c0_1 = arith.constant 0 : index
    %c0_2 = arith.constant 0 : index
    %1 = vector.load %arg1[%c0_1, %c0_2] : memref<24x128xf32, #tpu.memory_space<vmem>>, vector<24x128xf32>
    %cst = arith.constant dense<0.000000e+00> : vector<16x128xf32>
    %2 = tpu.matmul %0, %1, %cst {dimension_numbers = #tpu.dot_dimension_numbers<[1], [0], [0], [1], [0, 0, 1, 1], [], []>} : vector<16x24xf32>, vector<24x128xf32>, vector<16x128xf32> -> vector<16x128xf32>
    %c0_3 = arith.constant 0 : index
    %c0_4 = arith.constant 0 : index
    %3 = vector.load %arg3[%c0_3, %c0_4] : memref<16x1xf32, #tpu.memory_space<vmem>>, vector<16x1xf32>
    %4 = vector.broadcast %3 : vector<16x1xf32> to vector<16x128xf32>
    %5 = arith.addf %2, %4 : vector<16x128xf32>
    %cst_5 = arith.constant 0.000000e+00 : f32
    %6 = vector.broadcast %cst_5 : f32 to vector<16x128xf32>
    %7 = arith.cmpf oge, %5, %6 : vector<16x128xf32>
    %cst_6 = arith.constant 1.000000e-01 : f32
    %8 = vector.broadcast %cst_6 : f32 to vector<16x128xf32>
    %9 = arith.mulf %8, %5 : vector<16x128xf32>
    %10 = arith.select %7, %5, %9 : vector<16x128xi1>, vector<16x128xf32>
    %c0_7 = arith.constant 0 : index
    %c0_8 = arith.constant 0 : index
    %11 = vector.load %arg4[%c0_7, %c0_8] : memref<16x16xf32, #tpu.memory_space<vmem>>, vector<16x16xf32>
    %cst_9 = arith.constant dense<0.000000e+00> : vector<16x128xf32>
    %12 = tpu.matmul %11, %10, %cst_9 {dimension_numbers = #tpu.dot_dimension_numbers<[1], [0], [0], [1], [0, 0, 1, 1], [], []>} : vector<16x16xf32>, vector<16x128xf32>, vector<16x128xf32> -> vector<16x128xf32>
    %c0_10 = arith.constant 0 : index
    %c0_11 = arith.constant 0 : index
    %13 = vector.load %arg5[%c0_10, %c0_11] : memref<16x1xf32, #tpu.memory_space<vmem>>, vector<16x1xf32>
    %14 = vector.broadcast %13 : vector<16x1xf32> to vector<16x128xf32>
    %15 = arith.addf %12, %14 : vector<16x128xf32>
    %cst_12 = arith.constant 0.000000e+00 : f32
    %16 = vector.broadcast %cst_12 : f32 to vector<16x128xf32>
    %17 = arith.cmpf oge, %15, %16 : vector<16x128xf32>
    %cst_13 = arith.constant 1.000000e-01 : f32
    %18 = vector.broadcast %cst_13 : f32 to vector<16x128xf32>
    %19 = arith.mulf %18, %15 : vector<16x128xf32>
    %20 = arith.select %17, %15, %19 : vector<16x128xi1>, vector<16x128xf32>
    %c0_14 = arith.constant 0 : index
    %c0_15 = arith.constant 0 : index
    %21 = vector.load %arg6[%c0_14, %c0_15] : memref<16x16xf32, #tpu.memory_space<vmem>>, vector<16x16xf32>
    %cst_16 = arith.constant dense<0.000000e+00> : vector<16x128xf32>
    %22 = tpu.matmul %21, %20, %cst_16 {dimension_numbers = #tpu.dot_dimension_numbers<[1], [0], [0], [1], [0, 0, 1, 1], [], []>} : vector<16x16xf32>, vector<16x128xf32>, vector<16x128xf32> -> vector<16x128xf32>
    %c0_17 = arith.constant 0 : index
    %c0_18 = arith.constant 0 : index
    %23 = vector.load %arg7[%c0_17, %c0_18] : memref<16x1xf32, #tpu.memory_space<vmem>>, vector<16x1xf32>
    %24 = vector.broadcast %23 : vector<16x1xf32> to vector<16x128xf32>
    %25 = arith.addf %22, %24 : vector<16x128xf32>
    %c0_19 = arith.constant 0 : index
    %c0_20 = arith.constant 0 : index
    %26 = vector.load %arg8[%c0_19, %c0_20] : memref<16x128xf32, #tpu.memory_space<vmem>>, vector<16x128xf32>
    tpu.vector_store %arg8[%c0_19, %c0_20], %25 {strides = array<i32>} : memref<16x128xf32, #tpu.memory_space<vmem>>, vector<16x128xf32>,
    return
  }
  func.func @transform_0(%arg0: i32) -> (i32, i32) {
    %c0_i32 = arith.constant 0 : i32
    %c0_i32_0 = arith.constant 0 : i32
    return %c0_i32, %arg0 : i32, i32
  }
  func.func @transform_1(%arg0: i32) -> (i32, i32) {
    %c0_i32 = arith.constant 0 : i32
    %c0_i32_0 = arith.constant 0 : i32
    %c0_i32_1 = arith.constant 0 : i32
    return %c0_i32, %c0_i32_0 : i32, i32
  }
  func.func @transform_2(%arg0: i32) -> (i32, i32) {
    %c0_i32 = arith.constant 0 : i32
    %c0_i32_0 = arith.constant 0 : i32
    %c0_i32_1 = arith.constant 0 : i32
    return %c0_i32, %c0_i32_0 : i32, i32
  }
  func.func @transform_3(%arg0: i32) -> (i32, i32) {
    %c0_i32 = arith.constant 0 : i32
    %c0_i32_0 = arith.constant 0 : i32
    %c0_i32_1 = arith.constant 0 : i32
    return %c0_i32, %c0_i32_0 : i32, i32
  }
  func.func @transform_4(%arg0: i32) -> (i32, i32) {
    %c0_i32 = arith.constant 0 : i32
    %c0_i32_0 = arith.constant 0 : i32
    %c0_i32_1 = arith.constant 0 : i32
    return %c0_i32, %c0_i32_0 : i32, i32
  }
  func.func @transform_5(%arg0: i32) -> (i32, i32) {
    %c0_i32 = arith.constant 0 : i32
    %c0_i32_0 = arith.constant 0 : i32
    %c0_i32_1 = arith.constant 0 : i32
    return %c0_i32, %c0_i32_0 : i32, i32
  }
  func.func @transform_6(%arg0: i32) -> (i32, i32) {
    %c0_i32 = arith.constant 0 : i32
    %c0_i32_0 = arith.constant 0 : i32
    %c0_i32_1 = arith.constant 0 : i32
    return %c0_i32, %c0_i32_0 : i32, i32
  }
  func.func @transform_7(%arg0: i32) -> (i32, i32) {
    %c0_i32 = arith.constant 0 : i32
    %c0_i32_0 = arith.constant 0 : i32
    return %c0_i32, %arg0 : i32, i32
  }
}

</mosaic_0001>

<bundles_post_ra>
// kernel: node_model_forward.6
= control target key start
LH: loop header
LB: loop body
LE: loop exit
PB: predicated region body
PF: predicated region fallthrough
CT: control target
= control target key end

     0   :  { %vm49_vm0 = vcmask 1043456   ;;  %vm42_vm1 = vcmask 97280   ;;  %vm395_vm2 = vmmov 1   ;;  %v396_v2 = vmov 0   ;;  %s491_s0 = inlined_call_operand.vmem [shape: f32[12,128], index: 0, kind: input, shape index: {}]   ;;  %s492_s1 = inlined_call_operand.vmem [shape: f32[16,12], index: 1, kind: input, shape index: {}]   ;;  %s493_s2 = inlined_call_operand.vmem [shape: f32[16,1], index: 2, kind: input, shape index: {}]   ;;  %s494_s6 = inlined_call_operand.vmem [shape: f32[16,1], index: 6, kind: input, shape index: {}]   ;;  %s495_s3 = inlined_call_operand.vmem [shape: f32[16,16], index: 3, kind: input, shape index: {}]   ;;  %s496_s4 = inlined_call_operand.vmem [shape: f32[16,1], index: 4, kind: input, shape index: {}]   ;;  %s497_s5 = inlined_call_operand.vmem [shape: f32[16,16], index: 5, kind: input, shape index: {}]   ;;  %s498_s7 = inlined_call_operand.vmem [shape: f32[16,128], index: 7, kind: output, shape index: {}]  }
   0x1   :  { %v28_v0 = vld [vmem:[%s491_s0] sm:$0xff]  ;;  %v29_v1 = vld [vmem:[%s491_s0 + $0x8] sm:$0xf]  ;;  %vm378_vm3 = vmpackc.low %vm49_vm0, %vm395_vm2  ;;  %393 = vset.pattern.permute.xlu0 %v396_v2  ;;  %394 = vset.pattern.permute.xlu1 %v396_v2  ;;  %vm148_vm4 = vcmask 130048  }
   0x2   :  { %v377_v3 = vpack.c.bf16 %v29_v1, %v28_v0  ;;  %v26_v4 = vld [vmem:[%s492_s1] sm:$0xff]  ;;  %v31_v6 = vld [vmem:[%s493_s2 + $0x8] sm:$0xff] }
   0x3   :  { %v30_v5 = vld [vmem:[%s493_s2] sm:$0xff]  ;;  %360 = vmatprep.mubr.msk.f32.mxu0 %vm42_vm1, %v26_v4  ;;  %v27_v7 = vld [vmem:[%s492_s1 + $0x8] sm:$0xff] }
   0x4   :  { %34 = vperm.xlu0 %393, %v30_v5   ;;  %379 = vmatprep.subr.msk.bf16.mxu0 %vm378_vm3, %v377_v3  ;;  %v238_v8 = vld [vmem:[%s494_s6] sm:$0xff]  ;;  %v137_v11 = vld [vmem:[%s496_s4 + $0x8] sm:$0xff] }
   0x5   :  { %382 = vmatpush3.bf16.msk.msra.mxu0 %vm378_vm3, %v377_v3  ;;  %v134_v9 = vld [vmem:[%s495_s3] sm:$0xff]  ;;  %v239_v12 = vld [vmem:[%s494_s6 + $0x8] sm:$0xff] }
   0x6   :  { %367 = vmatprep.mubr.msk.f32.mxu1 %vm148_vm4, %v134_v9  ;;  %v136_v10 = vld [vmem:[%s496_s4] sm:$0xff]  ;;  %v135_v24 = vld [vmem:[%s495_s3 + $0x8] sm:$0xff] }
   0x7   :  { %140 = vperm.xlu1 %394, %v136_v10   ;;  %v236_v25 = vld [vmem:[%s497_s5] sm:$0xff]  ;;  %v237_v37 = vld [vmem:[%s497_s5 + $0x8] sm:$0xff] }
   0x8   :  { %39 = vperm.xlu0 %393, %v31_v6   ;;  %361 = vmatmul.mubr.msk.f32.vlgmr.msra.gmra.mrb[0].mxu0 %vm42_vm1, %v27_v7 }
   0x9   :  { %374 = vmatprep.mubr.msk.f32.mxu0 %vm148_vm4, %v236_v25 }
   0xb   :  { %145 = vperm.xlu1 %394, %v137_v11  }
   0xc   :  { %242 = vperm.xlu0 %393, %v238_v8  }
   0xf   :  { %247 = vperm.xlu1 %394, %v239_v12  }
  0x83   :  { %v35_v13 = vpop.permute.xlu0 %34 }
  0x86   :  { %v141_v26 = vpop.permute.xlu1 %140 }
  0x87   :  { %v40_v14 = vpop.permute.xlu0 %39 }
  0x8a   :  { %v146_v27 = vpop.permute.xlu1 %145 }
  0x8b   :  { %v243_v40 = vpop.permute.xlu0 %242 }
  0x8e   :  { %v248_v38 = vpop.permute.xlu1 %247 }
  0xdb   :  { %v362_v15 = vpop.f32.mrb[0].mxu0 }
  0xdc   :  { %v125_v16 = vadd.f32 %v362_v15, %v40_v14  ;;  %v119_v17 = vpop.f32.mrb[1].mxu0 }
  0xdd   :  { %v120_v18 = vadd.f32 %v119_v17, %v35_v13 }
  0xde   :  { %v131_v19 = vmul.f32 0.1, %v125_v16  ;;  %vm129_vm5 = vcmp.ge.f32.partialorder %v125_v16, 0.0 }
  0xdf   :  { %v130_v20 = vmul.f32 0.1, %v120_v18  ;;  %vm128_vm6 = vcmp.ge.f32.partialorder %v120_v18, 0.0 }
  0xe0   :  { %v133_v21 = vsel %vm129_vm5, %v125_v16, %v131_v19 }
  0xe1   :  { %v132_v22 = vsel %vm128_vm6, %v120_v18, %v130_v20 }
  0xe2   :  { %v383_v23 = vpack.c.bf16 %v133_v21, %v132_v22 }
  0xe4   :  { %384 = vmatprep.subr.bf16.mxu1 %v383_v23 }
  0xe5   :  { %386 = vmatpush3.bf16.msra.mxu1 %v383_v23 }
  0xe8   :  { %368 = vmatmul.mubr.msk.f32.vlgmr.msra.gmra.mrb[0].mxu1 %vm148_vm4, %v135_v24 }
 0x1bb   :  { %v369_v28 = vpop.f32.mrb[0].mxu1 }
 0x1bc   :  { %v227_v29 = vadd.f32 %v369_v28, %v146_v27  ;;  %v221_v30 = vpop.f32.mrb[1].mxu1 }
 0x1bd   :  { %v222_v31 = vadd.f32 %v221_v30, %v141_v26 }
 0x1be   :  { %vm231_vm7 = vcmp.ge.f32.partialorder %v227_v29, 0.0  ;;  %v233_v32 = vmul.f32 0.1, %v227_v29 }
 0x1bf   :  { %vm230_vm8 = vcmp.ge.f32.partialorder %v222_v31, 0.0  ;;  %v232_v33 = vmul.f32 0.1, %v222_v31 }
 0x1c0   :  { %v235_v34 = vsel %vm231_vm7, %v227_v29, %v233_v32 }
 0x1c1   :  { %v234_v35 = vsel %vm230_vm8, %v222_v31, %v232_v33 }
 0x1c2   :  { %v387_v36 = vpack.c.bf16 %v235_v34, %v234_v35 }
 0x1c4   :  { %388 = vmatprep.subr.bf16.mxu0 %v387_v36 }
 0x1c5   :  { %390 = vmatpush3.bf16.msra.mxu0 %v387_v36 }
 0x1c8   :  { %375 = vmatmul.mubr.msk.f32.vlgmr.msra.gmra.mrb[2].mxu0 %vm148_vm4, %v237_v37 }
 0x29b   :  { %v376_v39 = vpop.f32.mrb[2].mxu0 }
 0x29c   :  { %v328_v41 = vadd.f32 %v376_v39, %v248_v38  ;;  %v322_v42 = vpop.f32.mrb[3].mxu0 }
 0x29d   :  { %v323_v43 = vadd.f32 %v322_v42, %v243_v40 }
 0x29e   :  { %332 = vst [vmem:[%s498_s7 + $0x8] sm:$0xff] %v328_v41 }
 0x29f   :  { %331 = vst [vmem:[%s498_s7] sm:$0xff] %v323_v43 }

// kernel: node_model_forward.7
= control target key start
LH: loop header
LB: loop body
LE: loop exit
PB: predicated region body
PF: predicated region fallthrough
CT: control target
= control target key end

     0   :  { %v390_v0 = vmov 0   ;;  %v391_v7 = vmov 0.0|0.0   ;;  %vm392_vm0 = vmmov 0   ;;  %v393_v18 = vmov 0.0   ;;  %s531_s0 = inlined_call_operand.vmem [shape: s32[128,1], index: 0, kind: input, shape index: {}]   ;;  %s532_s2 = inlined_call_operand.vmem [shape: f32[17,128], index: 2, kind: output, shape index: {}]   ;;  %s533_s1 = inlined_call_operand.vmem [shape: f32[17,128], index: 1, kind: input, shape index: {}]  }
   0x1   :  { %387 = vset.pattern.permute.xlu1 %v390_v0  ;;  %386 = vset.pattern.permute.xlu0 %v390_v0  ;;  %v25_v1 = vld [vmem:[%s531_s0 + $0x10] sm:$0xff]  ;;  %v23_v2 = vld [vmem:[%s531_s0] sm:$0xff]  ;;  %v26_v3 = vld [vmem:[%s531_s0 + $0x18] sm:$0xff]  ;;  %17 = vst [vmem:[%s532_s2 + $0x10] sm:$0x1] %v393_v18  ;;  %v19_v19 = vlaneseq }
   0x2   :  { %46 = vperm.xlu1 %387, %v25_v1   ;;  %40 = vperm.xlu0 %386, %v23_v2   ;;  %v24_v4 = vld [vmem:[%s531_s0 + $0x8] sm:$0xff]  ;;  %v27_v6 = vld [vmem:[%s531_s0 + $0x20] sm:$0xff]  ;;  %v30_v8 = vld [vmem:[%s531_s0 + $0x38] sm:$0xff]  ;;  %v394_v25 = vmov 1.0|1.0  }
   0x3   :  { %v28_v5 = vld [vmem:[%s531_s0 + $0x28] sm:$0xff]  ;;  %341 = vmatprep.subr.bf16.mxu0 %v391_v7  ;;  %365 = vmatprep.subr.bf16.mxu1 %v391_v7  ;;  %v29_v9 = vld [vmem:[%s531_s0 + $0x30] sm:$0xff]  ;;  %v31_v11 = vld [vmem:[%s531_s0 + $0x40] sm:$0xff]  ;;  %v469_v22 = vand.u32 127, %v19_v19  ;;  %v235_v49 = vshrl.u32 %v19_v19, 7 }
   0x4   :  { %v32_v10 = vld [vmem:[%s531_s0 + $0x48] sm:$0xff]  ;;  %v34_v12 = vld [vmem:[%s531_s0 + $0x58] sm:$0xff]  ;;  %v33_v13 = vld [vmem:[%s531_s0 + $0x50] sm:$0xff]  ;;  %335 = vmatprep.mubr.msk.f32.mxu1 %vm392_vm0, %v393_v18  ;;  %332 = vmatprep.mubr.msk.f32.mxu0 %vm392_vm0, %v393_v18 }
   0x5   :  { %v36_v14 = vld [vmem:[%s531_s0 + $0x68] sm:$0xff]  ;;  %v35_v15 = vld [vmem:[%s531_s0 + $0x60] sm:$0xff]  ;;  %v38_v16 = vld [vmem:[%s531_s0 + $0x78] sm:$0xff]  ;;  %v236_v50 = vsub.s32 0, %v235_v49 }
   0x6   :  { %49 = vperm.xlu1 %387, %v26_v3   ;;  %43 = vperm.xlu0 %386, %v24_v4   ;;  %v37_v17 = vld [vmem:[%s531_s0 + $0x70] sm:$0xff]  ;;  %v139_v38 = vld [vmem:[%s533_s1 + $0x8] sm:$0xff]  ;;  %v138_v39 = vld [vmem:[%s533_s1] sm:$0xff] }
   0x7   :  { %v140_v40 = vld [vmem:[%s533_s1 + $0x10] sm:$0x1] }
   0x8   :  { %v137_v45 = vld [vmem:[%s532_s2 + $0x10] sm:$0x1] }
   0xa   :  { %55 = vperm.xlu1 %387, %v28_v5   ;;  %52 = vperm.xlu0 %386, %v27_v6  }
   0xe   :  { %61 = vperm.xlu1 %387, %v30_v8   ;;  %58 = vperm.xlu0 %386, %v29_v9  }
  0x12   :  { %67 = vperm.xlu1 %387, %v32_v10   ;;  %64 = vperm.xlu0 %386, %v31_v11  }
  0x16   :  { %73 = vperm.xlu1 %387, %v34_v12   ;;  %70 = vperm.xlu0 %386, %v33_v13  }
  0x1a   :  { %79 = vperm.xlu1 %387, %v36_v14   ;;  %76 = vperm.xlu0 %386, %v35_v15  }
  0x1e   :  { %85 = vperm.xlu1 %387, %v38_v16   ;;  %82 = vperm.xlu0 %386, %v37_v17  }
  0x81   :  { %v47_v20 = vpop.permute.xlu1 %46  ;;  %v41_v21 = vpop.permute.xlu0 %40 }
  0x82   :  { %vm87_vm2 = vcmp.eq.s32.totalorder %v41_v21, %v469_v22  ;;  %vm89_vm4 = vcmp.eq.s32.totalorder %v47_v20, %v469_v22 }
  0x85   :  { %v50_v23 = vpop.permute.xlu1 %49  ;;  %v44_v24 = vpop.permute.xlu0 %43 }
  0x86   :  { %vm88_vm1 = vcmp.eq.s32.totalorder %v44_v24, %v469_v22  ;;  %vm90_vm5 = vcmp.eq.s32.totalorder %v50_v23, %v469_v22 }
  0x87   :  { %vm342_vm3 = vmpackc.low %vm88_vm1, %vm87_vm2 }
  0x88   :  { %343 = vmatpush3.bf16.msk.msra.mxu0 %vm342_vm3, %v394_v25  ;;  %373 = vmatpush3.bf16.msk.msra.mxu1 %vm342_vm3, %v394_v25  ;;  %vm345_vm6 = vmpackc.low %vm90_vm5, %vm89_vm4 }
  0x89   :  { %v56_v26 = vpop.permute.xlu1 %55  ;;  %v53_v27 = vpop.permute.xlu0 %52  ;;  %344 = vmatprep.subr.bf16.mxu0 %v391_v7  ;;  %366 = vmatprep.subr.bf16.mxu1 %v391_v7 }
  0x8a   :  { %vm92_vm7 = vcmp.eq.s32.totalorder %v56_v26, %v469_v22  ;;  %vm91_vm8 = vcmp.eq.s32.totalorder %v53_v27, %v469_v22 }
  0x8b   :  { %vm348_vm9 = vmpackc.low %vm92_vm7, %vm91_vm8 }
  0x8c   :  { %346 = vmatpush3.bf16.msk.msra.mxu0 %vm345_vm6, %v394_v25  ;;  %374 = vmatpush3.bf16.msk.msra.mxu1 %vm345_vm6, %v394_v25 }
  0x8d   :  { %v62_v28 = vpop.permute.xlu1 %61  ;;  %v59_v29 = vpop.permute.xlu0 %58  ;;  %347 = vmatprep.subr.bf16.mxu0 %v391_v7  ;;  %367 = vmatprep.subr.bf16.mxu1 %v391_v7 }
  0x8e   :  { %vm94_vm10 = vcmp.eq.s32.totalorder %v62_v28, %v469_v22  ;;  %vm93_vm11 = vcmp.eq.s32.totalorder %v59_v29, %v469_v22 }
  0x8f   :  { %vm351_vm12 = vmpackc.low %vm94_vm10, %vm93_vm11 }
  0x90   :  { %349 = vmatpush3.bf16.msk.msra.mxu0 %vm348_vm9, %v394_v25  ;;  %375 = vmatpush3.bf16.msk.msra.mxu1 %vm348_vm9, %v394_v25 }
  0x91   :  { %v68_v30 = vpop.permute.xlu1 %67  ;;  %v65_v31 = vpop.permute.xlu0 %64  ;;  %350 = vmatprep.subr.bf16.mxu0 %v391_v7  ;;  %368 = vmatprep.subr.bf16.mxu1 %v391_v7 }
  0x92   :  { %vm96_vm13 = vcmp.eq.s32.totalorder %v68_v30, %v469_v22  ;;  %vm95_vm14 = vcmp.eq.s32.totalorder %v65_v31, %v469_v22 }
  0x93   :  { %vm354_vm15 = vmpackc.low %vm96_vm13, %vm95_vm14 }
  0x94   :  { %352 = vmatpush3.bf16.msk.msra.mxu0 %vm351_vm12, %v394_v25  ;;  %376 = vmatpush3.bf16.msk.msra.mxu1 %vm351_vm12, %v394_v25 }
  0x95   :  { %v74_v32 = vpop.permute.xlu1 %73  ;;  %v71_v33 = vpop.permute.xlu0 %70  ;;  %353 = vmatprep.subr.bf16.mxu0 %v391_v7  ;;  %369 = vmatprep.subr.bf16.mxu1 %v391_v7 }
  0x96   :  { %vm98_vm1 = vcmp.eq.s32.totalorder %v74_v32, %v469_v22  ;;  %vm97_vm2 = vcmp.eq.s32.totalorder %v71_v33, %v469_v22 }
  0x97   :  { %vm357_vm3 = vmpackc.low %vm98_vm1, %vm97_vm2 }
  0x98   :  { %355 = vmatpush3.bf16.msk.msra.mxu0 %vm354_vm15, %v394_v25  ;;  %377 = vmatpush3.bf16.msk.msra.mxu1 %vm354_vm15, %v394_v25 }
  0x99   :  { %v80_v34 = vpop.permute.xlu1 %79  ;;  %v77_v35 = vpop.permute.xlu0 %76  ;;  %356 = vmatprep.subr.bf16.mxu0 %v391_v7  ;;  %370 = vmatprep.subr.bf16.mxu1 %v391_v7 }
  0x9a   :  { %vm100_vm4 = vcmp.eq.s32.totalorder %v80_v34, %v469_v22  ;;  %vm99_vm5 = vcmp.eq.s32.totalorder %v77_v35, %v469_v22 }
  0x9b   :  { %vm360_vm6 = vmpackc.low %vm100_vm4, %vm99_vm5 }
  0x9c   :  { %358 = vmatpush3.bf16.msk.msra.mxu0 %vm357_vm3, %v394_v25  ;;  %378 = vmatpush3.bf16.msk.msra.mxu1 %vm357_vm3, %v394_v25 }
  0x9d   :  { %v86_v36 = vpop.permute.xlu1 %85  ;;  %v83_v37 = vpop.permute.xlu0 %82  ;;  %359 = vmatprep.subr.bf16.mxu0 %v391_v7  ;;  %371 = vmatprep.subr.bf16.mxu1 %v391_v7 }
  0x9e   :  { %vm102_vm7 = vcmp.eq.s32.totalorder %v86_v36, %v469_v22  ;;  %vm101_vm8 = vcmp.eq.s32.totalorder %v83_v37, %v469_v22 }
  0x9f   :  { %vm363_vm9 = vmpackc.low %vm102_vm7, %vm101_vm8 }
  0xa0   :  { %361 = vmatpush3.bf16.msk.msra.mxu0 %vm360_vm6, %v394_v25  ;;  %379 = vmatpush3.bf16.msk.msra.mxu1 %vm360_vm6, %v394_v25 }
  0xa1   :  { %362 = vmatprep.subr.bf16.mxu0 %v391_v7  ;;  %372 = vmatprep.subr.bf16.mxu1 %v391_v7 }
  0xa4   :  { %364 = vmatpush3.bf16.msk.msra.mxu0 %vm363_vm9, %v394_v25  ;;  %380 = vmatpush3.bf16.msk.msra.mxu1 %vm363_vm9, %v394_v25 }
  0xa7   :  { %336 = vmatmul.mubr.f32.vlgmr.msra.gmra.mrb[0].mxu1 %v139_v38  ;;  %333 = vmatmul.mubr.f32.vlgmr.msra.gmra.mrb[0].mxu0 %v138_v39 }
  0xa8   :  { %338 = vmatprep.mubr.msk.f32.mxu1 %vm392_vm0, %v393_v18 }
  0xab   :  { %339 = vmatmul.mubr.f32.gmra.mrb[2].mxu1 %v140_v40 }
 0x17a   :  { %v212_v41 = vpop.f32.mrb[0].mxu1  ;;  %v207_v42 = vpop.f32.mrb[0].mxu0 }
 0x17b   :  { %v337_v43 = vpop.f32.mrb[1].mxu1  ;;  %v334_v44 = vpop.f32.mrb[1].mxu0 }
 0x17e   :  { %v217_v46 = vpop.f32.mrb[2].mxu1 }
 0x17f   :  { %v223_v47 = vadd.f32 %v217_v46, %v137_v45  ;;  %v340_v48 = vpop.f32.mrb[3].mxu1 }
 0x181   :  { %226 = vst [vmem:[%s532_s2 + $0x10] sm:$0x1] %v223_v47 }
 0x188   :  { %v232_v51 = vld [vmem:[%s532_s2 + $0x10] sm:$0x1] }
 0x189   :  { %v233_v52 = vmax.f32 %v232_v51, 1.0 }
 0x18b   :  { %v237_v53 = vrot.slane %v233_v52, %v236_v50 }
 0x18d   :  { %388 = vrcp.f32 %v237_v53 }
 0x197   :  { %v389_v54 = vpop.eup %388 }
 0x198   :  { %v240_v55 = vmul.f32 %v389_v54, %v212_v41  ;;  %v241_v56 = vmul.f32 %v389_v54, %v232_v51  ;;  %v239_v57 = vmul.f32 %v389_v54, %v207_v42 }
 0x19a   :  { %243 = vst [vmem:[%s532_s2 + $0x8] sm:$0xff] %v240_v55  ;;  %244 = vst [vmem:[%s532_s2 + $0x10] sm:$0x1] %v241_v56 }
 0x19b   :  { %242 = vst [vmem:[%s532_s2] sm:$0xff] %v239_v57 }

// kernel: node_model_forward.5
= control target key start
LH: loop header
LB: loop body
LE: loop exit
PB: predicated region body
PF: predicated region fallthrough
CT: control target
= control target key end

     0   :  { %s1280_s17 = smov 0   ;;  %s1282_s18 = smov 0   ;;  %s1503_s0 = inlined_call_operand.vmem [shape: f32[12,128], index: 0, kind: input, shape index: {}]   ;;  %s1504_s1 = inlined_call_operand.vmem [shape: f32[12,1], index: 1, kind: input, shape index: {}]   ;;  %s1505_s2 = inlined_call_operand.vmem [shape: f32[12,1], index: 2, kind: input, shape index: {}]   ;;  %s1506_s3 = inlined_call_operand.vmem [shape: f32[16,12], index: 3, kind: input, shape index: {}]   ;;  %s1507_s4 = inlined_call_operand.vmem [shape: f32[16,1], index: 4, kind: input, shape index: {}]   ;;  %s1508_s5 = inlined_call_operand.vmem [shape: f32[16,1], index: 5, kind: input, shape index: {}]   ;;  %s1509_s6 = inlined_call_operand.vmem [shape: f32[16,1], index: 6, kind: input, shape index: {}]   ;;  %s1510_s7 = inlined_call_operand.vmem [shape: f32[16,16], index: 7, kind: input, shape index: {}]   ;;  %s1511_s8 = inlined_call_operand.vmem [shape: f32[16,1], index: 8, kind: input, shape index: {}]   ;;  %s1512_s9 = inlined_call_operand.vmem [shape: f32[12,2], index: 9, kind: output, shape index: {0}]   ;;  %s1513_s10 = inlined_call_operand.vmem [shape: f32[16,2], index: 10, kind: output, shape index: {1}]   ;;  %s1514_s11 = inlined_call_operand.vmem [shape: f32[16,2], index: 11, kind: output, shape index: {2}]  }
   0x1   :  { %s1284_s19 = smov 0  }
   0x2 LB: > { %s34_s20 = sadd.s32 1, %s1204_s18  ;;  %p1058_p0 = scmp.ge.s32.totalorder %s1208_s19, 1  ;;  %s1208_s19 = sphi %s1284_s19, %s22_s19   ;;  %s1204_s18 = sphi %s1282_s18, %s1516_s18   ;;  %s1200_s17 = sphi %s1280_s17, %s1515_s17  }
   0x3   : > { %p36_p1 = scmp.ge.s32.totalorder %s34_s20, 3  ;;  %p338_p2 = scmp.lt.s32.totalorder %s1208_s19, 4 }
   0x5   : > { %s1518_s20 = smov (%p36_p1, %s34_s20), 0  ;;  %p339_p3 = pnand %p1058_p0, %p338_p2 }
   0x6   : > { %p376_p4 = scmp.eq.s32.totalorder (!%p339_p3), %s1200_s17, 0 }
   0x7   : > { %342 = sbr.rel (%p339_p3) target bundleno = 1711 (0x6af), region = 56 }
   0xe   : > { %381 = sbr.rel (!%p376_p4) target bundleno = 21 (0x15), region = 60  ;;  %vm382_vm0 = vcmask (%p376_p4), 15360   ;;  %vm384_vm1 = vcmask (%p376_p4), 11264   ;;  %v1210_v0 = vmov (%p376_p4), 0.0  }
   0xf   : > { %383 = vst.msk [vmem:[%s1512_s9] sm:$0xff] (%p376_p4), %vm382_vm0, %v1210_v0  ;;  %386 = vst.msk [vmem:[%s1513_s10] sm:$0xff] (%p376_p4), %vm382_vm0, %v1210_v0 }
  0x10   : > { %387 = vst.msk [vmem:[%s1513_s10 + $0x8] sm:$0xff] (%p376_p4), %vm382_vm0, %v1210_v0  ;;  %388 = vst.msk [vmem:[%s1514_s11] sm:$0xff] (%p376_p4), %vm382_vm0, %v1210_v0 }
  0x11   : > { %389 = vst.msk [vmem:[%s1514_s11 + $0x8] sm:$0xff] (%p376_p4), %vm382_vm0, %v1210_v0 }
  0x12   : > { %385 = vst.msk [vmem:[%s1512_s9 + $0x8] sm:$0xf] (%p376_p4), %vm384_vm1, %v1210_v0 }
  0x15 PF: > { %v1322_v1 = vld [vmem:[%s1503_s0] sm:$0xff]  ;;  %v1327_v2 = vld [vmem:[%s1503_s0 + $0x8] sm:$0xf]  ;;  %v393_v3 = vlaneseq  ;;  %v1211_v5 = vmov 0.0   ;;  %p1061_p5 = scmp.ne.s32.totalorder %s1200_s17, 0 }
  0x16   : > { %403 = vadd.xlane.f32.xlu0 (!%p1061_p5), %v1322_v1  ;;  %v409_v7 = vmul.f32 (!%p1061_p5), %v1322_v1, %v1322_v1  ;;  %vm405_vm3 = vcmask (!%p1061_p5), 1043456   ;;  %v410_v8 = vmul.f32 (!%p1061_p5), %v1327_v2, %v1327_v2  ;;  %vm418_vm4 = vcmask (!%p1061_p5), 7168   ;;  %v416_v12 = vld [vmem:[%s1512_s9] sm:$0xff] (!%p1061_p5) }
  0x17   : > { %v394_v4 = vand.u32 127, %v393_v3  ;;  %402 = sbr.rel (%p1061_p5) target bundleno = 174 (0xae), region = 64  ;;  %v406_v9 = vsel (!%p1061_p5), %vm405_vm3, %v1327_v2, 0.0  ;;  %vm423_vm5 = vcmask (!%p1061_p5), 15360   ;;  %vm425_vm6 = vcmask (!%p1061_p5), 11264  }
  0x18   : > { %411 = vadd.xlane.f32.xlu1 (!%p1061_p5), %v409_v7  ;;  %v413_v10 = vsel (!%p1061_p5), %vm405_vm3, %v410_v8, 0.0 }
  0x19   : > { %vm397_vm2 = vcmp.lt.s32.totalorder %v394_v4, 16  ;;  %v417_v17 = vld [vmem:[%s1512_s9 + $0x8] sm:$0xf] (!%p1061_p5) }
  0x1a   : > { %v1329_v6 = vsel %vm397_vm2, 1.0, %v1211_v5  ;;  %407 = vadd.xlane.f32.xlu0 (!%p1061_p5), %v406_v9 }
  0x1c   : > { %414 = vadd.xlane.f32.xlu1 (!%p1061_p5), %v413_v10 }
  0xa3   : > { %v404_v11 = vpop.xlane.xlu0 %403 }
  0xa5   : > { %v412_v13 = vpop.xlane.xlu1 %411 }
  0xa6   : > { %v419_v14 = vsel %vm418_vm4, %v404_v11, %v412_v13 }
  0xa7   : > { %v421_v15 = vadd.f32 %v419_v14, %v416_v12  ;;  %v408_v16 = vpop.xlane.xlu0 %407 }
  0xa9   : > { %424 = vst.msk [vmem:[%s1512_s9] sm:$0xff] %vm423_vm5, %v421_v15  ;;  %v415_v18 = vpop.xlane.xlu1 %414 }
  0xaa   : > { %v420_v19 = vsel %vm418_vm4, %v408_v16, %v415_v18 }
  0xab   : > { %v422_v20 = vadd.f32 %v420_v19, %v417_v17 }
  0xad   : > { %426 = vst.msk [vmem:[%s1512_s9 + $0x8] sm:$0xf] %vm425_vm6, %v422_v20 }
  0xae PF: > { %p1062_p6 = scmp.ne.s32.totalorder %s1200_s17, 1 }
  0xaf   : > { %v451_v23 = vld [vmem:[%s1504_s1] sm:$0xff] (!%p1062_p6)  ;;  %s1212_s21 = smov (!%p1062_p6), 1   ;;  %v1213_v26 = vmov (!%p1062_p6), 0   ;;  %v452_v27 = vld [vmem:[%s1504_s1 + $0x8] sm:$0xf] (!%p1062_p6)  ;;  %v1214_v30 = vmov (!%p1062_p6), 1  }
  0xb0   : > { %430 = sbr.rel (%p1062_p6) target bundleno = 828 (0x33c), region = 68  ;;  %v431_v21 = vld [vmem:[%s1512_s9] sm:$0xff] (!%p1062_p6)  ;;  %455 = vrot.lane.b32.xlu1 (!%p1062_p6), %v451_v23, %s1212_s21  ;;  %1158 = vset.pattern.permute.xlu0 (!%p1062_p6), %v1213_v26  ;;  %v488_v44 = vld [vmem:[%s1505_s2 + $0x8] sm:$0xf] (!%p1062_p6)  ;;  %vm515_vm7 = vcmask (!%p1062_p6), 97280   ;;  %vm522_vm8 = vcmask (!%p1062_p6), 1043456  }
  0xb1   : > { %v433_v24 = vmul.f32 (!%p1062_p6), 0.0625, %v431_v21  ;;  %1159 = vset.pattern.permute.xlu1 (!%p1062_p6), %v1213_v26  ;;  %v487_v43 = vld [vmem:[%s1505_s2] sm:$0xff] (!%p1062_p6)  ;;  %v504_v45 = vld [vmem:[%s1507_s4 + $0x8] sm:$0xff] (!%p1062_p6)  ;;  %vm1215_vm9 = vmmov (!%p1062_p6), 1   ;;  %vm621_vm13 = vcmask (!%p1062_p6), 7168   ;;  %vm626_vm14 = vcmask (!%p1062_p6), 15360  }
  0xb2   : > { %v501_v46 = vld [vmem:[%s1506_s3] sm:$0xff] (!%p1062_p6)  ;;  %vm1109_vm10 = vmpackc.low (!%p1062_p6), %vm522_vm8, %vm1215_vm9  ;;  %v502_v61 = vld [vmem:[%s1506_s3 + $0x8] sm:$0xff] (!%p1062_p6) }
  0xb3   : > { %v435_v28 = vmul.f32 (!%p1062_p6), %v433_v24, %v433_v24  ;;  %1091 = vmatprep.mubr.msk.f32.mxu0 (!%p1062_p6), %vm515_vm7, %v501_v46  ;;  %v503_v47 = vld [vmem:[%s1507_s4] sm:$0xff] (!%p1062_p6)  ;;  %v620_v19 = vld [vmem:[%s1513_s10 + $0x8] sm:$0xff] (!%p1062_p6) }
  0xb4   : > { %v432_v22 = vld [vmem:[%s1512_s9 + $0x8] sm:$0xf] (!%p1062_p6)  ;;  %457 = vrot.lane.b32.xlu1 (!%p1062_p6), %v452_v27, %s1212_s21  ;;  %v619_v17 = vld [vmem:[%s1513_s10] sm:$0xff] (!%p1062_p6) }
  0xb5   : > { %v434_v25 = vmul.f32 (!%p1062_p6), 0.0625, %v432_v22  ;;  %439 = vrot.lane.b32.xlu0 (!%p1062_p6), %v435_v28, %s1212_s21 }
  0xb7   : > { %v436_v29 = vmul.f32 %v434_v25, %v434_v25 }
  0xb8   : > { %470 = vperm.xlu1 %1159, %v434_v25  }
  0xb9   : > { %441 = vrot.lane.b32.xlu0 %v436_v29, %s1212_s21 }
  0xbc   : > { %1160 = vset.pattern.permute.xlu1 %v1214_v30 }
  0xbd   : > { %465 = vperm.xlu0 %1158, %v433_v24  }
  0xc1   : > { %1161 = vset.pattern.permute.xlu0 %v1214_v30 }
 0x122   : > { %v456_v37 = vpop.permute.xlu1 %455 }
 0x126   : > { %v458_v40 = vpop.permute.xlu1 %457 }
 0x127   : > { %v440_v31 = vpop.permute.xlu0 %439 }
 0x128   : > { %v445_v32 = vsub.f32 %v433_v24, %v440_v31 }
 0x12a   : > { %v447_v33 = vadd.f32 1e-05, %v445_v32 }
 0x12b   : > { %v442_v34 = vpop.permute.xlu0 %441 }
 0x12c   : > { %1164 = vrsqrt.f32 %v447_v33  ;;  %v446_v35 = vsub.f32 %v434_v25, %v442_v34 }
 0x12e   : > { %v448_v36 = vadd.f32 1e-05, %v446_v35 }
 0x130   : > { %1166 = vrsqrt.f32 %v448_v36 }
 0x136   : > { %v1165_v38 = vpop.eup %1164 }
 0x137   : > { %v461_v39 = vmul.f32 %v1165_v38, %v456_v37  ;;  %v471_v48 = vpop.permute.xlu1 %470 }
 0x138   : > { %v474_v54 = vsub.f32 %v1327_v2, %v471_v48 }
 0x139   : > { %477 = vperm.xlu1 %1160, %v461_v39  }
 0x13a   : > { %v1167_v41 = vpop.eup %1166 }
 0x13b   : > { %v462_v42 = vmul.f32 %v1167_v41, %v458_v40 }
 0x13c   : > { %v466_v50 = vpop.permute.xlu0 %465 }
 0x13d   : > { %1162 = vset.pattern.permute.xlu1 %v1213_v26  ;;  %482 = vperm.xlu0 %1161, %v462_v42   ;;  %v473_v51 = vsub.f32 %v1322_v1, %v466_v50 }
 0x13e   : > { %491 = vperm.xlu1 %1162, %v487_v43  }
 0x141   : > { %1163 = vset.pattern.permute.xlu0 %v1213_v26 }
 0x142   : > { %496 = vperm.xlu1 %1162, %v488_v44   ;;  %507 = vperm.xlu0 %1163, %v503_v47  }
 0x146   : > { %512 = vperm.xlu1 %1162, %v504_v45  }
 0x1b8   : > { %v478_v49 = vpop.permute.xlu1 %477 }
 0x1b9   : > { %v485_v55 = vmul.f32 %v478_v49, %v473_v51 }
 0x1bc   : > { %v483_v52 = vpop.permute.xlu0 %482 }
 0x1bd   : > { %v492_v53 = vpop.permute.xlu1 %491  ;;  %v486_v56 = vmul.f32 %v483_v52, %v474_v54 }
 0x1be   : > { %v499_v58 = vadd.f32 %v492_v53, %v485_v55 }
 0x1c1   : > { %v497_v57 = vpop.permute.xlu1 %496  ;;  %v508_v62 = vpop.permute.xlu0 %507 }
 0x1c2   : > { %v500_v59 = vadd.f32 %v497_v57, %v486_v56 }
 0x1c4   : > { %v1108_v60 = vpack.c.bf16 %v500_v59, %v499_v58 }
 0x1c5   : > { %v513_v63 = vpop.permute.xlu1 %512 }
 0x1c6   : > { %1110 = vmatprep.subr.msk.bf16.mxu0 %vm1109_vm10, %v1108_v60 }
 0x1c7   : > { %1113 = vmatpush3.bf16.msk.msra.mxu0 %vm1109_vm10, %v1108_v60 }
 0x1ca   : > { %1092 = vmatmul.mubr.msk.f32.vlgmr.msra.gmra.mrb[0].mxu0 %vm515_vm7, %v502_v61 }
 0x29d   : > { %v1093_v0 = vpop.f32.mrb[0].mxu0 }
 0x29e   : > { %v598_v3 = vadd.f32 %v1093_v0, %v513_v63  ;;  %v592_v4 = vpop.f32.mrb[1].mxu0 }
 0x29f   : > { %v593_v5 = vadd.f32 %v592_v4, %v508_v62 }
 0x2a0   : > { %v604_v7 = vmul.f32 0.1, %v598_v3  ;;  %vm602_vm11 = vcmp.ge.f32.partialorder %v598_v3, 0.0 }
 0x2a1   : > { %v603_v8 = vmul.f32 0.1, %v593_v5  ;;  %vm601_vm12 = vcmp.ge.f32.partialorder %v593_v5, 0.0 }
 0x2a2   : > { %v606_v9 = vsel %vm602_vm11, %v598_v3, %v604_v7 }
 0x2a3   : > { %v608_v10 = vmul.f32 %v1329_v6, %v606_v9  ;;  %v605_v11 = vsel %vm601_vm12, %v593_v5, %v603_v8 }
 0x2a4   : > { %v607_v12 = vmul.f32 %v1329_v6, %v605_v11 }
 0x2a5   : > { %611 = vadd.xlane.f32.xlu0 %v608_v10  ;;  %v614_v14 = vmul.f32 %v608_v10, %v608_v10 }
 0x2a6   : > { %609 = vadd.xlane.f32.xlu1 %v607_v12  ;;  %v613_v13 = vmul.f32 %v607_v12, %v607_v12 }
 0x2a9   : > { %615 = vadd.xlane.f32.xlu0 %v613_v13 }
 0x2aa   : > { %617 = vadd.xlane.f32.xlu1 %v614_v14 }
 0x332   : > { %v612_v15 = vpop.xlane.xlu0 %611 }
 0x333   : > { %v610_v16 = vpop.xlane.xlu1 %609 }
 0x336   : > { %v616_v18 = vpop.xlane.xlu0 %615 }
 0x337   : > { %v622_v20 = vsel %vm621_vm13, %v610_v16, %v616_v18  ;;  %v618_v21 = vpop.xlane.xlu1 %617 }
 0x338   : > { %v624_v22 = vadd.f32 %v622_v20, %v619_v17  ;;  %v623_v23 = vsel %vm621_vm13, %v612_v15, %v618_v21 }
 0x339   : > { %v625_v24 = vadd.f32 %v623_v23, %v620_v19 }
 0x33a   : > { %627 = vst.msk [vmem:[%s1513_s10] sm:$0xff] %vm626_vm14, %v624_v22 }
 0x33b   : > { %628 = vst.msk [vmem:[%s1513_s10 + $0x8] sm:$0xff] %vm626_vm14, %v625_v24 }
 0x33c PF: > { %p1066_p7 = scmp.ne.s32.totalorder %s1200_s17, 2 }
 0x33d   : > { %v633_v25 = vld [vmem:[%s1512_s9] sm:$0xff] (!%p1066_p7)  ;;  %v634_v26 = vld [vmem:[%s1512_s9 + $0x8] sm:$0xf] (!%p1066_p7)  ;;  %s1216_s16 = smov (!%p1066_p7), 1   ;;  %v1217_v30 = vmov (!%p1066_p7), 0   ;;  %v1218_v34 = vmov (!%p1066_p7), 1  }
 0x33e   : > { %632 = sbr.rel (%p1066_p7) target bundleno = 1711 (0x6af), region = 72  ;;  %v653_v27 = vld [vmem:[%s1504_s1] sm:$0xff] (!%p1066_p7)  ;;  %v635_v28 = vmul.f32 (!%p1066_p7), 0.0625, %v633_v25  ;;  %v636_v29 = vmul.f32 (!%p1066_p7), 0.0625, %v634_v26  ;;  %1168 = vset.pattern.permute.xlu0 (!%p1066_p7), %v1217_v30  ;;  %v654_v31 = vld [vmem:[%s1504_s1 + $0x8] sm:$0xf] (!%p1066_p7)  ;;  %1169 = vset.pattern.permute.xlu1 (!%p1066_p7), %v1217_v30 }
 0x33f   : > { %657 = vrot.lane.b32.xlu1 (!%p1066_p7), %v653_v27, %s1216_s16  ;;  %v689_v48 = vld [vmem:[%s1505_s2] sm:$0xff] (!%p1066_p7)  ;;  %v690_v53 = vld [vmem:[%s1505_s2 + $0x8] sm:$0xf] (!%p1066_p7)  ;;  %vm717_vm15 = vcmask (!%p1066_p7), 97280   ;;  %vm724_vm0 = vcmask (!%p1066_p7), 1043456   ;;  %vm1219_vm1 = vmmov (!%p1066_p7), 1  }
 0x340   : > { %v637_v32 = vmul.f32 (!%p1066_p7), %v635_v28, %v635_v28  ;;  %v638_v33 = vmul.f32 (!%p1066_p7), %v636_v29, %v636_v29  ;;  %v829_v55 = vld [vmem:[%s1508_s5] sm:$0xff] (!%p1066_p7)  ;;  %v830_v56 = vld [vmem:[%s1508_s5 + $0x8] sm:$0xff] (!%p1066_p7)  ;;  %vm1115_vm2 = vmpackc.low (!%p1066_p7), %vm724_vm0, %vm1219_vm1  ;;  %vm893_vm3 = vcmask (!%p1066_p7), 130048   ;;  %vm995_vm8 = vcmask (!%p1066_p7), 7168  }
 0x341   : > { %v809_v45 = vld [vmem:[%s1513_s10] sm:$0xff] (!%p1066_p7)  ;;  %v706_v58 = vld [vmem:[%s1507_s4 + $0x8] sm:$0xff] (!%p1066_p7)  ;;  %vm1000_vm9 = vcmask (!%p1066_p7), 15360  }
 0x342   : > { %641 = vrot.lane.b32.xlu0 (!%p1066_p7), %v637_v32, %s1216_s16  ;;  %v810_v49 = vld [vmem:[%s1513_s10 + $0x8] sm:$0xff] (!%p1066_p7)  ;;  %v811_v50 = vmul.f32 (!%p1066_p7), 0.0625, %v809_v45  ;;  %v703_v57 = vld [vmem:[%s1506_s3] sm:$0xff] (!%p1066_p7) }
 0x343   : > { %659 = vrot.lane.b32.xlu1 (!%p1066_p7), %v654_v31, %s1216_s16  ;;  %v812_v52 = vmul.f32 (!%p1066_p7), 0.0625, %v810_v49  ;;  %1098 = vmatprep.mubr.msk.f32.mxu0 (!%p1066_p7), %vm717_vm15, %v703_v57  ;;  %v705_v59 = vld [vmem:[%s1507_s4] sm:$0xff] (!%p1066_p7)  ;;  %v866_v24 = vld [vmem:[%s1509_s6 + $0x8] sm:$0xff] (!%p1066_p7) }
 0x344   : > { %v813_v51 = vmul.f32 (!%p1066_p7), %v811_v50, %v811_v50  ;;  %v865_v22 = vld [vmem:[%s1509_s6] sm:$0xff] (!%p1066_p7)  ;;  %v882_v25 = vld [vmem:[%s1511_s8 + $0x8] sm:$0xff] (!%p1066_p7) }
 0x345   : > { %v814_v54 = vmul.f32 %v812_v52, %v812_v52  ;;  %v879_v26 = vld [vmem:[%s1510_s7] sm:$0xff] }
 0x346   : > { %643 = vrot.lane.b32.xlu0 %v638_v33, %s1216_s16  ;;  %1105 = vmatprep.mubr.msk.f32.mxu1 %vm893_vm3, %v879_v26  ;;  %v881_v27 = vld [vmem:[%s1511_s8] sm:$0xff] }
 0x347   : > { %672 = vperm.xlu1 %1169, %v636_v29  }
 0x34a   : > { %667 = vperm.xlu0 %1168, %v635_v28  }
 0x34b   : > { %1170 = vset.pattern.permute.xlu1 %v1218_v34 }
 0x34e   : > { %1171 = vset.pattern.permute.xlu0 %v1218_v34 }
 0x3b1   : > { %v658_v41 = vpop.permute.xlu1 %657 }
 0x3b4   : > { %v642_v35 = vpop.permute.xlu0 %641 }
 0x3b5   : > { %v647_v36 = vsub.f32 %v635_v28, %v642_v35  ;;  %v660_v44 = vpop.permute.xlu1 %659 }
 0x3b7   : > { %v649_v37 = vadd.f32 1e-05, %v647_v36 }
 0x3b8   : > { %v644_v38 = vpop.permute.xlu0 %643 }
 0x3b9   : > { %1178 = vrsqrt.f32 %v649_v37  ;;  %v648_v39 = vsub.f32 %v636_v29, %v644_v38 }
 0x3bb   : > { %v650_v40 = vadd.f32 1e-05, %v648_v39 }
 0x3bd   : > { %1180 = vrsqrt.f32 %v650_v40 }
 0x3c3   : > { %v1179_v42 = vpop.eup %1178 }
 0x3c4   : > { %v663_v43 = vmul.f32 %v1179_v42, %v658_v41 }
 0x3c6   : > { %679 = vperm.xlu1 %1170, %v663_v43   ;;  %v673_v60 = vpop.permute.xlu1 %672 }
 0x3c7   : > { %v1181_v46 = vpop.eup %1180  ;;  %v676_v4 = vsub.f32 %v1327_v2, %v673_v60 }
 0x3c8   : > { %v664_v47 = vmul.f32 %v1181_v46, %v660_v44 }
 0x3c9   : > { %v668_v61 = vpop.permute.xlu0 %667 }
 0x3ca   : > { %1172 = vset.pattern.permute.xlu1 %v1217_v30  ;;  %684 = vperm.xlu0 %1171, %v664_v47   ;;  %v675_v63 = vsub.f32 %v1322_v1, %v668_v61  ;;  %v704_v1 = vld [vmem:[%s1506_s3 + $0x8] sm:$0xff] }
 0x3cb   : > { %693 = vperm.xlu1 %1172, %v689_v48  }
 0x3ce   : > { %817 = vrot.lane.b32.xlu0 %v813_v51, %s1216_s16  ;;  %v880_v51 = vld [vmem:[%s1510_s7 + $0x8] sm:$0xff] }
 0x3cf   : > { %698 = vperm.xlu1 %1172, %v690_v53   ;;  %1173 = vset.pattern.permute.xlu0 %v1217_v30 }
 0x3d2   : > { %833 = vrot.lane.b32.xlu0 %v829_v55, %s1216_s16 }
 0x3d3   : > { %819 = vrot.lane.b32.xlu1 %v814_v54, %s1216_s16 }
 0x3d6   : > { %709 = vperm.xlu0 %1173, %v705_v59  }
 0x3d7   : > { %835 = vrot.lane.b32.xlu1 %v830_v56, %s1216_s16 }
 0x3da   : > { %848 = vperm.xlu0 %1173, %v812_v52  }
 0x3db   : > { %714 = vperm.xlu1 %1172, %v706_v58  }
 0x3de   : > { %1175 = vset.pattern.permute.xlu0 %v1218_v34 }
 0x3df   : > { %843 = vperm.xlu1 %1172, %v811_v50  }
 0x3e3   : > { %1174 = vset.pattern.permute.xlu1 %v1218_v34 }
 0x445   : > { %v680_v62 = vpop.permute.xlu1 %679 }
 0x446   : > { %v687_v5 = vmul.f32 %v680_v62, %v675_v63 }
 0x449   : > { %v685_v0 = vpop.permute.xlu0 %684 }
 0x44a   : > { %v694_v3 = vpop.permute.xlu1 %693  ;;  %v688_v7 = vmul.f32 %v685_v0, %v676_v4 }
 0x44b   : > { %v701_v11 = vadd.f32 %v694_v3, %v687_v5 }
 0x44d   : > { %v818_v8 = vpop.permute.xlu0 %817 }
 0x44e   : > { %v699_v9 = vpop.permute.xlu1 %698  ;;  %v823_v10 = vsub.f32 %v811_v50, %v818_v8 }
 0x44f   : > { %v702_v12 = vadd.f32 %v699_v9, %v688_v7  ;;  %v993_v7 = vld [vmem:[%s1514_s11] sm:$0xff]  ;;  %v994_v9 = vld [vmem:[%s1514_s11 + $0x8] sm:$0xff] }
 0x450   : > { %v825_v13 = vadd.f32 1e-05, %v823_v10 }
 0x451   : > { %v1114_v14 = vpack.c.bf16 %v702_v12, %v701_v11  ;;  %v834_v17 = vpop.permute.xlu0 %833 }
 0x452   : > { %v820_v15 = vpop.permute.xlu1 %819  ;;  %1182 = vrsqrt.f32 %v825_v13 }
 0x453   : > { %v824_v16 = vsub.f32 %v812_v52, %v820_v15  ;;  %1116 = vmatprep.subr.msk.bf16.mxu0 %vm1115_vm2, %v1114_v14 }
 0x454   : > { %1119 = vmatpush3.bf16.msk.msra.mxu0 %vm1115_vm2, %v1114_v14 }
 0x455   : > { %v826_v2 = vadd.f32 1e-05, %v824_v16 }
 0x456   : > { %v836_v21 = vpop.permute.xlu1 %835 }
 0x457   : > { %1184 = vrsqrt.f32 %v826_v2  ;;  %1099 = vmatmul.mubr.msk.f32.vlgmr.msra.gmra.mrb[0].mxu0 %vm717_vm15, %v704_v1 }
 0x45a   : > { %v715_v28 = vpop.permute.xlu1 %714 }
 0x45c   : > { %v1183_v18 = vpop.eup %1182 }
 0x45d   : > { %v839_v19 = vmul.f32 %v1183_v18, %v834_v17 }
 0x45e   : > { %v844_v29 = vpop.permute.xlu1 %843 }
 0x45f   : > { %855 = vperm.xlu1 %1174, %v839_v19  }
 0x461   : > { %v1185_v20 = vpop.eup %1184 }
 0x462   : > { %v840_v23 = vmul.f32 %v1185_v20, %v836_v21 }
 0x463   : > { %1176 = vset.pattern.permute.xlu1 %v1217_v30 }
 0x464   : > { %869 = vperm.xlu1 %1176, %v865_v22   ;;  %860 = vperm.xlu0 %1175, %v840_v23  }
 0x468   : > { %874 = vperm.xlu1 %1176, %v866_v24   ;;  %1177 = vset.pattern.permute.xlu0 %v1217_v30  ;;  %v710_v30 = vpop.permute.xlu0 %709 }
 0x469   : > { %885 = vperm.xlu0 %1177, %v881_v27  }
 0x46c   : > { %890 = vperm.xlu1 %1176, %v882_v25   ;;  %v849_v33 = vpop.permute.xlu0 %848 }
 0x4de   : > { %v856_v31 = vpop.permute.xlu1 %855 }
 0x4e3   : > { %v870_v37 = vpop.permute.xlu1 %869  ;;  %v861_v41 = vpop.permute.xlu0 %860 }
 0x4e7   : > { %v875_v46 = vpop.permute.xlu1 %874 }
 0x4e8   : > { %v886_v52 = vpop.permute.xlu0 %885 }
 0x4eb   : > { %v891_v53 = vpop.permute.xlu1 %890 }
 0x52a   : > { %v1100_v32 = vpop.f32.mrb[0].mxu0 }
 0x52b   : > { %v800_v34 = vadd.f32 %v1100_v32, %v715_v28  ;;  %v794_v35 = vpop.f32.mrb[1].mxu0 }
 0x52c   : > { %v795_v36 = vadd.f32 %v794_v35, %v710_v30 }
 0x52d   : > { %vm804_vm4 = vcmp.ge.f32.partialorder %v800_v34, 0.0  ;;  %v806_v38 = vmul.f32 0.1, %v800_v34 }
 0x52e   : > { %vm803_vm5 = vcmp.ge.f32.partialorder %v795_v36, 0.0  ;;  %v805_v39 = vmul.f32 0.1, %v795_v36 }
 0x52f   : > { %v808_v40 = vsel %vm804_vm4, %v800_v34, %v806_v38 }
 0x530   : > { %v807_v42 = vsel %vm803_vm5, %v795_v36, %v805_v39  ;;  %v852_v43 = vsub.f32 %v808_v40, %v849_v33 }
 0x531   : > { %v851_v44 = vsub.f32 %v807_v42, %v844_v29 }
 0x532   : > { %v864_v45 = vmul.f32 %v861_v41, %v852_v43 }
 0x533   : > { %v863_v47 = vmul.f32 %v856_v31, %v851_v44 }
 0x534   : > { %v878_v48 = vadd.f32 %v875_v46, %v864_v45 }
 0x535   : > { %v877_v49 = vadd.f32 %v870_v37, %v863_v47 }
 0x537   : > { %v1120_v50 = vpack.c.bf16 %v878_v48, %v877_v49 }
 0x539   : > { %1121 = vmatprep.subr.bf16.mxu1 %v1120_v50 }
 0x53a   : > { %1123 = vmatpush3.bf16.msra.mxu1 %v1120_v50 }
 0x53d   : > { %1106 = vmatmul.mubr.msk.f32.vlgmr.msra.gmra.mrb[0].mxu1 %vm893_vm3, %v880_v51 }
 0x610   : > { %v1107_v54 = vpop.f32.mrb[0].mxu1 }
 0x611   : > { %v972_v55 = vadd.f32 %v1107_v54, %v891_v53  ;;  %v966_v56 = vpop.f32.mrb[1].mxu1 }
 0x612   : > { %v967_v57 = vadd.f32 %v966_v56, %v886_v52 }
 0x613   : > { %v978_v58 = vmul.f32 0.1, %v972_v55  ;;  %vm976_vm6 = vcmp.ge.f32.partialorder %v972_v55, 0.0 }
 0x614   : > { %v977_v59 = vmul.f32 0.1, %v967_v57  ;;  %vm975_vm7 = vcmp.ge.f32.partialorder %v967_v57, 0.0 }
 0x615   : > { %v980_v60 = vsel %vm976_vm6, %v972_v55, %v978_v58 }
 0x616   : > { %v982_v61 = vmul.f32 %v1329_v6, %v980_v60  ;;  %v979_v62 = vsel %vm975_vm7, %v967_v57, %v977_v59 }
 0x617   : > { %v981_v63 = vmul.f32 %v1329_v6, %v979_v62 }
 0x618   : > { %985 = vadd.xlane.f32.xlu0 %v982_v61  ;;  %v988_v3 = vmul.f32 %v982_v61, %v982_v61 }
 0x619   : > { %983 = vadd.xlane.f32.xlu1 %v981_v63  ;;  %v987_v0 = vmul.f32 %v981_v63, %v981_v63 }
 0x61c   : > { %989 = vadd.xlane.f32.xlu0 %v987_v0 }
 0x61d   : > { %991 = vadd.xlane.f32.xlu1 %v988_v3 }
 0x6a5   : > { %v986_v4 = vpop.xlane.xlu0 %985 }
 0x6a6   : > { %v984_v5 = vpop.xlane.xlu1 %983 }
 0x6a9   : > { %v990_v8 = vpop.xlane.xlu0 %989 }
 0x6aa   : > { %v996_v6 = vsel %vm995_vm8, %v984_v5, %v990_v8  ;;  %v992_v10 = vpop.xlane.xlu1 %991 }
 0x6ab   : > { %v998_v11 = vadd.f32 %v996_v6, %v993_v7  ;;  %v997_v12 = vsel %vm995_vm8, %v986_v4, %v992_v10 }
 0x6ac   : > { %v999_v13 = vadd.f32 %v997_v12, %v994_v9 }
 0x6ad   : > { %1001 = vst.msk [vmem:[%s1514_s11] sm:$0xff] %vm1000_vm9, %v998_v11 }
 0x6ae   : > { %1002 = vst.msk [vmem:[%s1514_s11 + $0x8] sm:$0xff] %vm1000_vm9, %v999_v13 }
 0x6af PF: > { %s22_s19 = sadd.s32 1, %s1208_s19   ;;  %s1515_s17 = smov %s1204_s18 }
 0x6b0   : > { %p19_p8 = scmp.ge.s32.totalorder %s22_s19, 5   ;;  %s1516_s18 = smov %s1518_s20 }
 0x6b2   :  { %21 = sbr.rel (!%p19_p8) target bundleno = 2 (0x2), region = 114 }

// kernel: node_model_forward.8
= control target key start
LH: loop header
LB: loop body
LE: loop exit
PB: predicated region body
PF: predicated region fallthrough
CT: control target
= control target key end

     0   :  { %s1348_s17 = smov 0   ;;  %s1350_s18 = smov 0   ;;  %s1610_s0 = inlined_call_operand.vmem [shape: f32[24,128], index: 0, kind: input, shape index: {}]   ;;  %s1611_s1 = inlined_call_operand.vmem [shape: f32[24,1], index: 1, kind: input, shape index: {}]   ;;  %s1612_s2 = inlined_call_operand.vmem [shape: f32[24,1], index: 2, kind: input, shape index: {}]   ;;  %s1613_s3 = inlined_call_operand.vmem [shape: f32[16,24], index: 3, kind: input, shape index: {}]   ;;  %s1614_s4 = inlined_call_operand.vmem [shape: f32[16,1], index: 4, kind: input, shape index: {}]   ;;  %s1615_s5 = inlined_call_operand.vmem [shape: f32[16,1], index: 5, kind: input, shape index: {}]   ;;  %s1616_s6 = inlined_call_operand.vmem [shape: f32[16,1], index: 6, kind: input, shape index: {}]   ;;  %s1617_s7 = inlined_call_operand.vmem [shape: f32[16,16], index: 7, kind: input, shape index: {}]   ;;  %s1618_s8 = inlined_call_operand.vmem [shape: f32[16,1], index: 8, kind: input, shape index: {}]   ;;  %s1619_s9 = inlined_call_operand.vmem [shape: f32[24,2], index: 9, kind: output, shape index: {0}]   ;;  %s1620_s10 = inlined_call_operand.vmem [shape: f32[16,2], index: 10, kind: output, shape index: {1}]   ;;  %s1621_s11 = inlined_call_operand.vmem [shape: f32[16,2], index: 11, kind: output, shape index: {2}]  }
   0x1   :  { %s1352_s19 = smov 0  }
   0x2 LB: > { %s34_s20 = sadd.s32 1, %s1274_s18  ;;  %p1126_p0 = scmp.ge.s32.totalorder %s1278_s19, 1  ;;  %s1278_s19 = sphi %s1352_s19, %s22_s19   ;;  %s1274_s18 = sphi %s1350_s18, %s1623_s18   ;;  %s1270_s17 = sphi %s1348_s17, %s1622_s17  }
   0x3   : > { %p36_p1 = scmp.ge.s32.totalorder %s34_s20, 3  ;;  %p338_p2 = scmp.lt.s32.totalorder %s1278_s19, 4 }
   0x5   : > { %s1625_s20 = smov (%p36_p1, %s34_s20), 0  ;;  %p339_p3 = pnand %p1126_p0, %p338_p2 }
   0x6   : > { %p376_p4 = scmp.eq.s32.totalorder (!%p339_p3), %s1270_s17, 0 }
   0x7   : > { %342 = sbr.rel (%p339_p3) target bundleno = 1722 (0x6ba), region = 56 }
   0xe   : > { %381 = sbr.rel (!%p376_p4) target bundleno = 21 (0x15), region = 60  ;;  %vm382_vm0 = vcmask (%p376_p4), 15360   ;;  %v1280_v0 = vmov (%p376_p4), 0.0  }
   0xf   : > { %383 = vst.msk [vmem:[%s1619_s9] sm:$0xff] (%p376_p4), %vm382_vm0, %v1280_v0  ;;  %384 = vst.msk [vmem:[%s1619_s9 + $0x8] sm:$0xff] (%p376_p4), %vm382_vm0, %v1280_v0 }
  0x10   : > { %385 = vst.msk [vmem:[%s1619_s9 + $0x10] sm:$0xff] (%p376_p4), %vm382_vm0, %v1280_v0  ;;  %386 = vst.msk [vmem:[%s1620_s10] sm:$0xff] (%p376_p4), %vm382_vm0, %v1280_v0 }
  0x11   : > { %387 = vst.msk [vmem:[%s1620_s10 + $0x8] sm:$0xff] (%p376_p4), %vm382_vm0, %v1280_v0  ;;  %388 = vst.msk [vmem:[%s1621_s11] sm:$0xff] (%p376_p4), %vm382_vm0, %v1280_v0 }
  0x12   : > { %389 = vst.msk [vmem:[%s1621_s11 + $0x8] sm:$0xff] (%p376_p4), %vm382_vm0, %v1280_v0 }
  0x15 PF: > { %v1393_v1 = vld [vmem:[%s1610_s0] sm:$0xff]  ;;  %v1398_v2 = vld [vmem:[%s1610_s0 + $0x8] sm:$0xff]  ;;  %v1403_v3 = vld [vmem:[%s1610_s0 + $0x10] sm:$0xff]  ;;  %v394_v4 = vlaneseq  ;;  %v1281_v6 = vmov 0.0   ;;  %p1129_p5 = scmp.ne.s32.totalorder %s1270_s17, 0 }
  0x16   : > { %408 = vadd.xlane.f32.xlu1 (!%p1129_p5), %v1403_v3  ;;  %404 = vadd.xlane.f32.xlu0 (!%p1129_p5), %v1393_v1  ;;  %v410_v8 = vmul.f32 (!%p1129_p5), %v1393_v1, %v1393_v1  ;;  %v411_v9 = vmul.f32 (!%p1129_p5), %v1398_v2, %v1398_v2  ;;  %v412_v10 = vmul.f32 (!%p1129_p5), %v1403_v3, %v1403_v3  ;;  %vm422_vm2 = vcmask (!%p1129_p5), 7168   ;;  %v419_v13 = vld [vmem:[%s1619_s9] sm:$0xff] (!%p1129_p5)  ;;  %v420_v18 = vld [vmem:[%s1619_s9 + $0x8] sm:$0xff] (!%p1129_p5) }
  0x17   : > { %v395_v5 = vand.u32 127, %v394_v4  ;;  %403 = sbr.rel (%p1129_p5) target bundleno = 176 (0xb0), region = 64  ;;  %vm429_vm3 = vcmask (!%p1129_p5), 15360   ;;  %v421_v19 = vld [vmem:[%s1619_s9 + $0x10] sm:$0xff] (!%p1129_p5) }
  0x19   : > { %vm398_vm1 = vcmp.lt.s32.totalorder %v395_v5, 8 }
  0x1a   : > { %v1405_v7 = vsel %vm398_vm1, 1.0, %v1281_v6  ;;  %406 = vadd.xlane.f32.xlu0 (!%p1129_p5), %v1398_v2  ;;  %413 = vadd.xlane.f32.xlu1 (!%p1129_p5), %v410_v8 }
  0x1e   : > { %415 = vadd.xlane.f32.xlu0 %v411_v9  ;;  %417 = vadd.xlane.f32.xlu1 %v412_v10 }
  0xa3   : > { %v409_v11 = vpop.xlane.xlu1 %408  ;;  %v405_v12 = vpop.xlane.xlu0 %404 }
  0xa7   : > { %v407_v14 = vpop.xlane.xlu0 %406  ;;  %v414_v15 = vpop.xlane.xlu1 %413 }
  0xa8   : > { %v423_v16 = vsel %vm422_vm2, %v405_v12, %v414_v15 }
  0xa9   : > { %v426_v17 = vadd.f32 %v423_v16, %v419_v13 }
  0xab   : > { %430 = vst.msk [vmem:[%s1619_s9] sm:$0xff] %vm429_vm3, %v426_v17  ;;  %v416_v20 = vpop.xlane.xlu0 %415  ;;  %v418_v21 = vpop.xlane.xlu1 %417 }
  0xac   : > { %v424_v22 = vsel %vm422_vm2, %v407_v14, %v416_v20  ;;  %v425_v23 = vsel %vm422_vm2, %v409_v11, %v418_v21 }
  0xad   : > { %v427_v24 = vadd.f32 %v424_v22, %v420_v18  ;;  %v428_v25 = vadd.f32 %v425_v23, %v421_v19 }
  0xaf   : > { %431 = vst.msk [vmem:[%s1619_s9 + $0x8] sm:$0xff] %vm429_vm3, %v427_v24  ;;  %432 = vst.msk [vmem:[%s1619_s9 + $0x10] sm:$0xff] %vm429_vm3, %v428_v25 }
  0xb0 PF: > { %p1130_p6 = scmp.ne.s32.totalorder %s1270_s17, 1 }
  0xb1   : > { %v1282_v32 = vmov (!%p1130_p6), 0   ;;  %s1283_s29 = smov (!%p1130_p6), 1   ;;  %v467_v36 = vld [vmem:[%s1611_s1] sm:$0xff] (!%p1130_p6)  ;;  %v469_v37 = vld [vmem:[%s1611_s1 + $0x10] sm:$0xff] (!%p1130_p6)  ;;  %v468_v38 = vld [vmem:[%s1611_s1 + $0x8] sm:$0xff] (!%p1130_p6)  ;;  %v1284_v40 = vmov (!%p1130_p6), 1  }
  0xb2   : > { %436 = sbr.rel (%p1130_p6) target bundleno = 835 (0x343), region = 68  ;;  %v437_v26 = vld [vmem:[%s1619_s9] sm:$0xff] (!%p1130_p6)  ;;  %1225 = vset.pattern.permute.xlu1 (!%p1130_p6), %v1282_v32  ;;  %1224 = vset.pattern.permute.xlu0 (!%p1130_p6), %v1282_v32  ;;  %v522_v41 = vld [vmem:[%s1612_s2 + $0x8] sm:$0xff] (!%p1130_p6)  ;;  %v523_v60 = vld [vmem:[%s1612_s2 + $0x10] sm:$0xff] (!%p1130_p6)  ;;  %vm556_vm4 = vcmask (!%p1130_p6), 195584   ;;  %vm658_vm7 = vcmask (!%p1130_p6), 7168  }
  0xb3   : > { %v440_v29 = vmul.f32 (!%p1130_p6), 0.125, %v437_v26  ;;  %v521_v39 = vld [vmem:[%s1612_s2] sm:$0xff] (!%p1130_p6)  ;;  %v545_v61 = vld [vmem:[%s1614_s4 + $0x8] sm:$0xff] (!%p1130_p6)  ;;  %vm663_vm8 = vcmask (!%p1130_p6), 15360  }
  0xb4   : > { %v544_v62 = vld [vmem:[%s1614_s4] sm:$0xff] (!%p1130_p6)  ;;  %v543_v23 = vld [vmem:[%s1613_s3 + $0x8] sm:$0xff] (!%p1130_p6) }
  0xb5   : > { %v443_v33 = vmul.f32 (!%p1130_p6), %v440_v29, %v440_v29  ;;  %v542_v63 = vld [vmem:[%s1613_s3] sm:$0xff] (!%p1130_p6) }
  0xb6   : > { %v439_v27 = vld [vmem:[%s1619_s9 + $0x10] sm:$0xff] (!%p1130_p6)  ;;  %v438_v28 = vld [vmem:[%s1619_s9 + $0x8] sm:$0xff] (!%p1130_p6)  ;;  %1161 = vmatprep.mubr.msk.f32.mxu0 (!%p1130_p6), %vm556_vm4, %v542_v63 }
  0xb7   : > { %v442_v30 = vmul.f32 (!%p1130_p6), 0.125, %v439_v27  ;;  %v441_v31 = vmul.f32 (!%p1130_p6), 0.125, %v438_v28  ;;  %449 = vrot.lane.b32.xlu0 (!%p1130_p6), %v443_v33, %s1283_s29 }
  0xb9   : > { %v445_v34 = vmul.f32 %v442_v30, %v442_v30  ;;  %v444_v35 = vmul.f32 %v441_v31, %v441_v31 }
  0xbb   : > { %453 = vrot.lane.b32.xlu1 %v445_v34, %s1283_s29  ;;  %451 = vrot.lane.b32.xlu0 %v444_v35, %s1283_s29 }
  0xbf   : > { %473 = vrot.lane.b32.xlu1 %v467_v36, %s1283_s29  ;;  %475 = vrot.lane.b32.xlu0 %v468_v38, %s1283_s29 }
  0xc3   : > { %477 = vrot.lane.b32.xlu1 %v469_v37, %s1283_s29  ;;  %487 = vperm.xlu0 %1224, %v440_v29  }
  0xc7   : > { %492 = vperm.xlu1 %1225, %v441_v31   ;;  %1227 = vset.pattern.permute.xlu0 %v1284_v40 }
  0xcb   : > { %526 = vperm.xlu1 %1225, %v521_v39   ;;  %v656_v39 = vld [vmem:[%s1620_s10] sm:$0xff] }
  0xcf   : > { %531 = vperm.xlu1 %1225, %v522_v41  }
  0xd3   : > { %1226 = vset.pattern.permute.xlu1 %v1284_v40 }
 0x129   : > { %v450_v42 = vpop.permute.xlu0 %449 }
 0x12a   : > { %v458_v44 = vsub.f32 %v440_v29, %v450_v42 }
 0x12c   : > { %v461_v46 = vadd.f32 1e-05, %v458_v44 }
 0x12d   : > { %v454_v43 = vpop.permute.xlu1 %453  ;;  %v452_v48 = vpop.permute.xlu0 %451 }
 0x12e   : > { %v460_v45 = vsub.f32 %v442_v30, %v454_v43  ;;  %1230 = vrsqrt.f32 %v461_v46  ;;  %v459_v49 = vsub.f32 %v441_v31, %v452_v48  ;;  %v657_v43 = vld [vmem:[%s1620_s10 + $0x8] sm:$0xff] }
 0x130   : > { %v463_v47 = vadd.f32 1e-05, %v460_v45  ;;  %v462_v50 = vadd.f32 1e-05, %v459_v49 }
 0x131   : > { %v474_v51 = vpop.permute.xlu1 %473  ;;  %v476_v56 = vpop.permute.xlu0 %475 }
 0x132   : > { %1232 = vrsqrt.f32 %v463_v47 }
 0x133   : > { %1234 = vrsqrt.f32 %v462_v50 }
 0x135   : > { %v478_v53 = vpop.permute.xlu1 %477 }
 0x138   : > { %v1231_v52 = vpop.eup %1230 }
 0x139   : > { %v482_v55 = vmul.f32 %v1231_v52, %v474_v51 }
 0x13b   : > { %505 = vperm.xlu1 %1226, %v482_v55  }
 0x13c   : > { %v1233_v54 = vpop.eup %1232 }
 0x13d   : > { %v484_v57 = vmul.f32 %v1233_v54, %v478_v53  ;;  %v1235_v58 = vpop.eup %1234 }
 0x13e   : > { %v483_v59 = vmul.f32 %v1235_v58, %v476_v56 }
 0x13f   : > { %515 = vperm.xlu1 %1226, %v484_v57  }
 0x140   : > { %510 = vperm.xlu0 %1227, %v483_v59  }
 0x142   : > { %v488_v6 = vpop.permute.xlu0 %487 }
 0x143   : > { %1229 = vset.pattern.permute.xlu1 %v1282_v32  ;;  %v500_v8 = vsub.f32 %v1393_v1, %v488_v6 }
 0x144   : > { %1228 = vset.pattern.permute.xlu0 %v1282_v32  ;;  %536 = vperm.xlu1 %1229, %v523_v60  }
 0x145   : > { %497 = vperm.xlu0 %1228, %v442_v30  }
 0x146   : > { %v493_v0 = vpop.permute.xlu1 %492 }
 0x147   : > { %v501_v10 = vsub.f32 %v1398_v2, %v493_v0 }
 0x148   : > { %553 = vperm.xlu1 %1229, %v545_v61  }
 0x149   : > { %548 = vperm.xlu0 %1228, %v544_v62  }
 0x14a   : > { %v527_v4 = vpop.permute.xlu1 %526 }
 0x14e   : > { %v532_v5 = vpop.permute.xlu1 %531 }
 0x1ba   : > { %v506_v9 = vpop.permute.xlu1 %505 }
 0x1bb   : > { %v518_v11 = vmul.f32 %v506_v9, %v500_v8 }
 0x1bd   : > { %v539_v14 = vadd.f32 %v527_v4, %v518_v11 }
 0x1be   : > { %v516_v15 = vpop.permute.xlu1 %515 }
 0x1bf   : > { %v511_v12 = vpop.permute.xlu0 %510 }
 0x1c0   : > { %v519_v13 = vmul.f32 %v511_v12, %v501_v10 }
 0x1c2   : > { %v540_v16 = vadd.f32 %v532_v5, %v519_v13 }
 0x1c3   : > { %v537_v21 = vpop.permute.xlu1 %536 }
 0x1c4   : > { %v498_v17 = vpop.permute.xlu0 %497  ;;  %v1180_v18 = vpack.c.bf16 %v540_v16, %v539_v14 }
 0x1c5   : > { %v502_v19 = vsub.f32 %v1403_v3, %v498_v17 }
 0x1c6   : > { %1181 = vmatprep.subr.bf16.mxu0 %v1180_v18 }
 0x1c7   : > { %v520_v20 = vmul.f32 %v516_v15, %v502_v19  ;;  %1183 = vmatpush3.bf16.msra.mxu0 %v1180_v18  ;;  %v554_v24 = vpop.permute.xlu1 %553 }
 0x1c8   : > { %v549_v26 = vpop.permute.xlu0 %548 }
 0x1c9   : > { %v541_v22 = vadd.f32 %v537_v21, %v520_v20 }
 0x1cb   : > { %1159 = vmatprep.subr.mxu0 %v541_v22 }
 0x1cc   : > { %1160 = vmatpush3.msra.mxu0 %v541_v22 }
 0x1cd   : > { %1162 = vmatmul.mubr.msk.f32.vlgmr.msra.gmra.mrb[0].mxu0 %vm556_vm4, %v543_v23 }
 0x2a0   : > { %v1163_v25 = vpop.f32.mrb[0].mxu0 }
 0x2a1   : > { %v635_v27 = vadd.f32 %v1163_v25, %v554_v24  ;;  %v629_v28 = vpop.f32.mrb[1].mxu0 }
 0x2a2   : > { %v630_v29 = vadd.f32 %v629_v28, %v549_v26 }
 0x2a3   : > { %v641_v30 = vmul.f32 0.1, %v635_v27  ;;  %vm639_vm5 = vcmp.ge.f32.partialorder %v635_v27, 0.0 }
 0x2a4   : > { %v640_v31 = vmul.f32 0.1, %v630_v29  ;;  %vm638_vm6 = vcmp.ge.f32.partialorder %v630_v29, 0.0 }
 0x2a5   : > { %v643_v32 = vsel %vm639_vm5, %v635_v27, %v641_v30 }
 0x2a6   : > { %v645_v33 = vmul.f32 %v1405_v7, %v643_v32  ;;  %v642_v34 = vsel %vm638_vm6, %v630_v29, %v640_v31 }
 0x2a7   : > { %v644_v35 = vmul.f32 %v1405_v7, %v642_v34 }
 0x2a8   : > { %648 = vadd.xlane.f32.xlu1 %v645_v33  ;;  %v651_v37 = vmul.f32 %v645_v33, %v645_v33 }
 0x2a9   : > { %646 = vadd.xlane.f32.xlu0 %v644_v35  ;;  %v650_v36 = vmul.f32 %v644_v35, %v644_v35 }
 0x2ad   : > { %652 = vadd.xlane.f32.xlu0 %v650_v36 }
 0x2b1   : > { %654 = vadd.xlane.f32.xlu0 %v651_v37 }
 0x335   : > { %v649_v44 = vpop.xlane.xlu1 %648 }
 0x336   : > { %v647_v38 = vpop.xlane.xlu0 %646 }
 0x33a   : > { %v653_v40 = vpop.xlane.xlu0 %652 }
 0x33b   : > { %v659_v41 = vsel %vm658_vm7, %v647_v38, %v653_v40 }
 0x33c   : > { %v661_v42 = vadd.f32 %v659_v41, %v656_v39 }
 0x33e   : > { %664 = vst.msk [vmem:[%s1620_s10] sm:$0xff] %vm663_vm8, %v661_v42  ;;  %v655_v45 = vpop.xlane.xlu0 %654 }
 0x33f   : > { %v660_v46 = vsel %vm658_vm7, %v649_v44, %v655_v45 }
 0x340   : > { %v662_v47 = vadd.f32 %v660_v46, %v657_v43 }
 0x342   : > { %665 = vst.msk [vmem:[%s1620_s10 + $0x8] sm:$0xff] %vm663_vm8, %v662_v47 }
 0x343 PF: > { %p1133_p7 = scmp.ne.s32.totalorder %s1270_s17, 2 }
 0x344   : > { %v670_v48 = vld [vmem:[%s1619_s9] sm:$0xff] (!%p1133_p7)  ;;  %v672_v49 = vld [vmem:[%s1619_s9 + $0x10] sm:$0xff] (!%p1133_p7)  ;;  %v671_v50 = vld [vmem:[%s1619_s9 + $0x8] sm:$0xff] (!%p1133_p7)  ;;  %v1285_v54 = vmov (!%p1133_p7), 0   ;;  %s1286_s17 = smov (!%p1133_p7), 1   ;;  %v1287_v62 = vmov (!%p1133_p7), 1  }
 0x345   : > { %669 = sbr.rel (%p1133_p7) target bundleno = 1722 (0x6ba), region = 72  ;;  %v673_v51 = vmul.f32 (!%p1133_p7), 0.125, %v670_v48  ;;  %v675_v52 = vmul.f32 (!%p1133_p7), 0.125, %v672_v49  ;;  %v674_v53 = vmul.f32 (!%p1133_p7), 0.125, %v671_v50  ;;  %1237 = vset.pattern.permute.xlu1 (!%p1133_p7), %v1285_v54  ;;  %1236 = vset.pattern.permute.xlu0 (!%p1133_p7), %v1285_v54  ;;  %v700_v58 = vld [vmem:[%s1611_s1] sm:$0xff] (!%p1133_p7)  ;;  %v702_v59 = vld [vmem:[%s1611_s1 + $0x10] sm:$0xff] (!%p1133_p7) }
 0x346   : > { %v701_v60 = vld [vmem:[%s1611_s1 + $0x8] sm:$0xff] (!%p1133_p7)  ;;  %v754_v61 = vld [vmem:[%s1612_s2] sm:$0xff] (!%p1133_p7)  ;;  %v756_v26 = vld [vmem:[%s1612_s2 + $0x10] sm:$0xff] (!%p1133_p7)  ;;  %vm789_vm9 = vcmask (!%p1133_p7), 195584   ;;  %vm961_vm10 = vcmask (!%p1133_p7), 130048   ;;  %vm1063_vm15 = vcmask (!%p1133_p7), 7168  }
 0x347   : > { %v676_v55 = vmul.f32 (!%p1133_p7), %v673_v51, %v673_v51  ;;  %v678_v56 = vmul.f32 (!%p1133_p7), %v675_v52, %v675_v52  ;;  %v677_v57 = vmul.f32 (!%p1133_p7), %v674_v53, %v674_v53  ;;  %v755_v63 = vld [vmem:[%s1612_s2 + $0x8] sm:$0xff] (!%p1133_p7)  ;;  %v877_v23 = vld [vmem:[%s1620_s10] sm:$0xff] (!%p1133_p7)  ;;  %vm1068_vm0 = vcmask (!%p1133_p7), 15360  }
 0x348   : > { %v879_v25 = vmul.f32 (!%p1133_p7), 0.125, %v877_v23  ;;  %v898_v29 = vld [vmem:[%s1615_s5 + $0x8] sm:$0xff] (!%p1133_p7)  ;;  %v897_v30 = vld [vmem:[%s1615_s5] sm:$0xff] (!%p1133_p7) }
 0x349   : > { %682 = vrot.lane.b32.xlu0 (!%p1133_p7), %v676_v55, %s1286_s17  ;;  %686 = vrot.lane.b32.xlu1 (!%p1133_p7), %v678_v56, %s1286_s17  ;;  %v878_v22 = vld [vmem:[%s1620_s10 + $0x8] sm:$0xff] (!%p1133_p7)  ;;  %v775_v31 = vld [vmem:[%s1613_s3] sm:$0xff] (!%p1133_p7) }
 0x34a   : > { %v880_v24 = vmul.f32 (!%p1133_p7), 0.125, %v878_v22  ;;  %v881_v28 = vmul.f32 (!%p1133_p7), %v879_v25, %v879_v25  ;;  %1170 = vmatprep.mubr.msk.f32.mxu0 (!%p1133_p7), %vm789_vm9, %v775_v31  ;;  %v778_v32 = vld [vmem:[%s1614_s4 + $0x8] sm:$0xff] (!%p1133_p7)  ;;  %v777_v33 = vld [vmem:[%s1614_s4] sm:$0xff] (!%p1133_p7) }
 0x34b   : > { %v948_v31 = vld [vmem:[%s1617_s7 + $0x8] sm:$0xff] (!%p1133_p7) }
 0x34c   : > { %v882_v27 = vmul.f32 %v880_v24, %v880_v24 }
 0x34d   : > { %684 = vrot.lane.b32.xlu0 %v677_v57, %s1286_s17  ;;  %706 = vrot.lane.b32.xlu1 %v700_v58, %s1286_s17 }
 0x351   : > { %710 = vrot.lane.b32.xlu1 %v702_v59, %s1286_s17  ;;  %708 = vrot.lane.b32.xlu0 %v701_v60, %s1286_s17 }
 0x355   : > { %725 = vperm.xlu1 %1237, %v674_v53   ;;  %720 = vperm.xlu0 %1236, %v673_v51  }
 0x359   : > { %759 = vperm.xlu1 %1237, %v754_v61   ;;  %1239 = vset.pattern.permute.xlu0 %v1287_v62 }
 0x35d   : > { %764 = vperm.xlu1 %1237, %v755_v63  }
 0x361   : > { %1238 = vset.pattern.permute.xlu1 %v1287_v62 }
 0x3bb   : > { %v683_v0 = vpop.permute.xlu0 %682  ;;  %v687_v4 = vpop.permute.xlu1 %686 }
 0x3bc   : > { %v691_v5 = vsub.f32 %v673_v51, %v683_v0  ;;  %v693_v6 = vsub.f32 %v675_v52, %v687_v4  ;;  %v933_v0 = vld [vmem:[%s1616_s6] sm:$0xff]  ;;  %v934_v4 = vld [vmem:[%s1616_s6 + $0x8] sm:$0xff] }
 0x3be   : > { %v694_v8 = vadd.f32 1e-05, %v691_v5  ;;  %v696_v9 = vadd.f32 1e-05, %v693_v6  ;;  %v949_v5 = vld [vmem:[%s1618_s8] sm:$0xff]  ;;  %v950_v6 = vld [vmem:[%s1618_s8 + $0x8] sm:$0xff] }
 0x3bf   : > { %v685_v10 = vpop.permute.xlu0 %684  ;;  %v707_v13 = vpop.permute.xlu1 %706 }
 0x3c0   : > { %1246 = vrsqrt.f32 %v694_v8  ;;  %v692_v11 = vsub.f32 %v674_v53, %v685_v10  ;;  %v947_v8 = vld [vmem:[%s1617_s7] sm:$0xff] }
 0x3c1   : > { %1248 = vrsqrt.f32 %v696_v9  ;;  %1177 = vmatprep.mubr.msk.f32.mxu1 %vm961_vm10, %v947_v8 }
 0x3c2   : > { %v695_v12 = vadd.f32 1e-05, %v692_v11 }
 0x3c3   : > { %v711_v15 = vpop.permute.xlu1 %710  ;;  %v709_v18 = vpop.permute.xlu0 %708 }
 0x3c4   : > { %1250 = vrsqrt.f32 %v695_v12 }
 0x3ca   : > { %v1247_v14 = vpop.eup %1246 }
 0x3cb   : > { %v1249_v16 = vpop.eup %1248  ;;  %v715_v17 = vmul.f32 %v1247_v14, %v707_v13 }
 0x3cc   : > { %v717_v19 = vmul.f32 %v1249_v16, %v711_v15 }
 0x3cd   : > { %738 = vperm.xlu1 %1238, %v715_v17  }
 0x3ce   : > { %v1251_v20 = vpop.eup %1250 }
 0x3cf   : > { %v716_v21 = vmul.f32 %v1251_v20, %v709_v18 }
 0x3d1   : > { %748 = vperm.xlu1 %1238, %v717_v19   ;;  %743 = vperm.xlu0 %1239, %v716_v21  }
 0x3d4   : > { %v726_v34 = vpop.permute.xlu1 %725  ;;  %v721_v37 = vpop.permute.xlu0 %720 }
 0x3d5   : > { %1241 = vset.pattern.permute.xlu1 %v1285_v54  ;;  %1240 = vset.pattern.permute.xlu0 %v1285_v54  ;;  %v733_v38 = vsub.f32 %v1393_v1, %v721_v37  ;;  %v734_v40 = vsub.f32 %v1398_v2, %v726_v34  ;;  %v776_v2 = vld [vmem:[%s1613_s3 + $0x8] sm:$0xff] }
 0x3d6   : > { %769 = vperm.xlu1 %1241, %v756_v26   ;;  %730 = vperm.xlu0 %1240, %v675_v52  }
 0x3d8   : > { %v760_v35 = vpop.permute.xlu1 %759 }
 0x3da   : > { %887 = vrot.lane.b32.xlu1 %v882_v27, %s1286_s17  ;;  %885 = vrot.lane.b32.xlu0 %v881_v28, %s1286_s17 }
 0x3dc   : > { %v765_v36 = vpop.permute.xlu1 %764 }
 0x3de   : > { %903 = vrot.lane.b32.xlu1 %v898_v29, %s1286_s17  ;;  %901 = vrot.lane.b32.xlu0 %v897_v30, %s1286_s17 }
 0x3e2   : > { %786 = vperm.xlu1 %1241, %v778_v32   ;;  %781 = vperm.xlu0 %1240, %v777_v33  }
 0x3e6   : > { %916 = vperm.xlu1 %1241, %v880_v24   ;;  %911 = vperm.xlu0 %1240, %v879_v25  }
 0x3ea   : > { %1243 = vset.pattern.permute.xlu1 %v1287_v62  ;;  %1242 = vset.pattern.permute.xlu0 %v1287_v62 }
 0x44c   : > { %v739_v39 = vpop.permute.xlu1 %738 }
 0x44d   : > { %v751_v41 = vmul.f32 %v739_v39, %v733_v38 }
 0x44f   : > { %v772_v45 = vadd.f32 %v760_v35, %v751_v41 }
 0x450   : > { %v749_v42 = vpop.permute.xlu1 %748  ;;  %v744_v43 = vpop.permute.xlu0 %743 }
 0x451   : > { %v752_v44 = vmul.f32 %v744_v43, %v734_v40 }
 0x453   : > { %v773_v46 = vadd.f32 %v765_v36, %v752_v44 }
 0x455   : > { %v770_v47 = vpop.permute.xlu1 %769  ;;  %v731_v48 = vpop.permute.xlu0 %730  ;;  %v1184_v49 = vpack.c.bf16 %v773_v46, %v772_v45 }
 0x456   : > { %v735_v50 = vsub.f32 %v1403_v3, %v731_v48 }
 0x457   : > { %1185 = vmatprep.subr.bf16.mxu0 %v1184_v49 }
 0x458   : > { %v753_v51 = vmul.f32 %v749_v42, %v735_v50  ;;  %1187 = vmatpush3.bf16.msra.mxu0 %v1184_v49 }
 0x459   : > { %v888_v52 = vpop.permute.xlu1 %887  ;;  %v886_v53 = vpop.permute.xlu0 %885 }
 0x45a   : > { %v892_v1 = vsub.f32 %v880_v24, %v888_v52  ;;  %v891_v55 = vsub.f32 %v879_v25, %v886_v53  ;;  %v774_v56 = vadd.f32 %v770_v47, %v753_v51  ;;  %v1061_v47 = vld [vmem:[%s1621_s11] sm:$0xff] }
 0x45c   : > { %v894_v57 = vadd.f32 1e-05, %v892_v1  ;;  %v893_v58 = vadd.f32 1e-05, %v891_v55  ;;  %1168 = vmatprep.subr.mxu0 %v774_v56 }
 0x45d   : > { %1169 = vmatpush3.msra.mxu0 %v774_v56  ;;  %v904_v59 = vpop.permute.xlu1 %903  ;;  %v902_v62 = vpop.permute.xlu0 %901 }
 0x45e   : > { %1252 = vrsqrt.f32 %v894_v57  ;;  %1171 = vmatmul.mubr.msk.f32.vlgmr.msra.gmra.mrb[0].mxu0 %vm789_vm9, %v776_v2 }
 0x45f   : > { %1254 = vrsqrt.f32 %v893_v58 }
 0x461   : > { %v782_v9 = vpop.permute.xlu0 %781 }
 0x465   : > { %v912_v10 = vpop.permute.xlu0 %911 }
 0x468   : > { %v1253_v3 = vpop.eup %1252 }
 0x469   : > { %v1255_v60 = vpop.eup %1254  ;;  %v908_v61 = vmul.f32 %v1253_v3, %v904_v59 }
 0x46a   : > { %v907_v63 = vmul.f32 %v1255_v60, %v902_v62 }
 0x46b   : > { %928 = vperm.xlu1 %1243, %v908_v61  }
 0x46c   : > { %923 = vperm.xlu0 %1242, %v907_v63  }
 0x46f   : > { %1244 = vset.pattern.permute.xlu1 %v1285_v54 }
 0x470   : > { %937 = vperm.xlu1 %1244, %v933_v0   ;;  %1245 = vset.pattern.permute.xlu0 %v1285_v54  ;;  %v787_v54 = vpop.permute.xlu1 %786 }
 0x471   : > { %942 = vperm.xlu0 %1245, %v934_v4  }
 0x474   : > { %953 = vperm.xlu1 %1244, %v949_v5   ;;  %v917_v11 = vpop.permute.xlu1 %916 }
 0x478   : > { %958 = vperm.xlu1 %1244, %v950_v6  }
 0x4ea   : > { %v929_v18 = vpop.permute.xlu1 %928 }
 0x4eb   : > { %v924_v15 = vpop.permute.xlu0 %923 }
 0x4ef   : > { %v938_v27 = vpop.permute.xlu1 %937 }
 0x4f0   : > { %v943_v24 = vpop.permute.xlu0 %942 }
 0x4f3   : > { %v954_v32 = vpop.permute.xlu1 %953 }
 0x4f7   : > { %v959_v33 = vpop.permute.xlu1 %958 }
 0x531   : > { %v1172_v12 = vpop.f32.mrb[0].mxu0 }
 0x532   : > { %v868_v13 = vadd.f32 %v1172_v12, %v787_v54  ;;  %v862_v14 = vpop.f32.mrb[1].mxu0 }
 0x533   : > { %v863_v16 = vadd.f32 %v862_v14, %v782_v9 }
 0x534   : > { %vm872_vm11 = vcmp.ge.f32.partialorder %v868_v13, 0.0  ;;  %v874_v17 = vmul.f32 0.1, %v868_v13 }
 0x535   : > { %vm871_vm12 = vcmp.ge.f32.partialorder %v863_v16, 0.0  ;;  %v873_v19 = vmul.f32 0.1, %v863_v16 }
 0x536   : > { %v876_v20 = vsel %vm872_vm11, %v868_v13, %v874_v17 }
 0x537   : > { %v875_v21 = vsel %vm871_vm12, %v863_v16, %v873_v19  ;;  %v920_v22 = vsub.f32 %v876_v20, %v917_v11 }
 0x538   : > { %v919_v23 = vsub.f32 %v875_v21, %v912_v10 }
 0x539   : > { %v932_v25 = vmul.f32 %v929_v18, %v920_v22 }
 0x53a   : > { %v931_v26 = vmul.f32 %v924_v15, %v919_v23 }
 0x53b   : > { %v946_v28 = vadd.f32 %v943_v24, %v932_v25 }
 0x53c   : > { %v945_v29 = vadd.f32 %v938_v27, %v931_v26 }
 0x53e   : > { %v1188_v30 = vpack.c.bf16 %v946_v28, %v945_v29 }
 0x540   : > { %1189 = vmatprep.subr.bf16.mxu1 %v1188_v30 }
 0x541   : > { %1191 = vmatpush3.bf16.msra.mxu1 %v1188_v30 }
 0x544   : > { %1178 = vmatmul.mubr.msk.f32.vlgmr.msra.gmra.mrb[0].mxu1 %vm961_vm10, %v948_v31 }
 0x617   : > { %v1179_v34 = vpop.f32.mrb[0].mxu1 }
 0x618   : > { %v1040_v35 = vadd.f32 %v1179_v34, %v959_v33  ;;  %v1034_v36 = vpop.f32.mrb[1].mxu1 }
 0x619   : > { %v1035_v37 = vadd.f32 %v1034_v36, %v954_v32 }
 0x61a   : > { %v1046_v38 = vmul.f32 0.1, %v1040_v35  ;;  %vm1044_vm13 = vcmp.ge.f32.partialorder %v1040_v35, 0.0 }
 0x61b   : > { %v1045_v39 = vmul.f32 0.1, %v1035_v37  ;;  %vm1043_vm14 = vcmp.ge.f32.partialorder %v1035_v37, 0.0 }
 0x61c   : > { %v1048_v40 = vsel %vm1044_vm13, %v1040_v35, %v1046_v38 }
 0x61d   : > { %v1050_v41 = vmul.f32 %v1405_v7, %v1048_v40  ;;  %v1047_v42 = vsel %vm1043_vm14, %v1035_v37, %v1045_v39 }
 0x61e   : > { %v1049_v43 = vmul.f32 %v1405_v7, %v1047_v42  ;;  %v1062_v7 = vld [vmem:[%s1621_s11 + $0x8] sm:$0xff] }
 0x61f   : > { %1053 = vadd.xlane.f32.xlu1 %v1050_v41  ;;  %v1056_v45 = vmul.f32 %v1050_v41, %v1050_v41 }
 0x620   : > { %1051 = vadd.xlane.f32.xlu0 %v1049_v43  ;;  %v1055_v44 = vmul.f32 %v1049_v43, %v1049_v43 }
 0x624   : > { %1057 = vadd.xlane.f32.xlu0 %v1055_v44 }
 0x628   : > { %1059 = vadd.xlane.f32.xlu0 %v1056_v45 }
 0x6ac   : > { %v1054_v51 = vpop.xlane.xlu1 %1053 }
 0x6ad   : > { %v1052_v46 = vpop.xlane.xlu0 %1051 }
 0x6b1   : > { %v1058_v48 = vpop.xlane.xlu0 %1057 }
 0x6b2   : > { %v1064_v49 = vsel %vm1063_vm15, %v1052_v46, %v1058_v48 }
 0x6b3   : > { %v1066_v50 = vadd.f32 %v1064_v49, %v1061_v47 }
 0x6b5   : > { %1069 = vst.msk [vmem:[%s1621_s11] sm:$0xff] %vm1068_vm0, %v1066_v50  ;;  %v1060_v52 = vpop.xlane.xlu0 %1059 }
 0x6b6   : > { %v1065_v53 = vsel %vm1063_vm15, %v1054_v51, %v1060_v52 }
 0x6b7   : > { %v1067_v1 = vadd.f32 %v1065_v53, %v1062_v7 }
 0x6b9   : > { %1070 = vst.msk [vmem:[%s1621_s11 + $0x8] sm:$0xff] %vm1068_vm0, %v1067_v1 }
 0x6ba PF: > { %s22_s19 = sadd.s32 1, %s1278_s19   ;;  %s1622_s17 = smov %s1274_s18 }
 0x6bb   : > { %p19_p8 = scmp.ge.s32.totalorder %s22_s19, 5   ;;  %s1623_s18 = smov %s1625_s20 }
 0x6bd   :  { %21 = sbr.rel (!%p19_p8) target bundleno = 2 (0x2), region = 114 }

// kernel: node_model_forward.9
= control target key start
LH: loop header
LB: loop body
LE: loop exit
PB: predicated region body
PF: predicated region fallthrough
CT: control target
= control target key end

     0   :  { %vm43_vm0 = vcmask 195584   ;;  %v391_v2 = vmov 0   ;;  %vm145_vm1 = vcmask 130048   ;;  %s489_s0 = inlined_call_operand.vmem [shape: f32[24,128], index: 0, kind: input, shape index: {}]   ;;  %s490_s1 = inlined_call_operand.vmem [shape: f32[16,24], index: 1, kind: input, shape index: {}]   ;;  %s491_s2 = inlined_call_operand.vmem [shape: f32[16,1], index: 2, kind: input, shape index: {}]   ;;  %s492_s6 = inlined_call_operand.vmem [shape: f32[16,1], index: 6, kind: input, shape index: {}]   ;;  %s493_s3 = inlined_call_operand.vmem [shape: f32[16,16], index: 3, kind: input, shape index: {}]   ;;  %s494_s4 = inlined_call_operand.vmem [shape: f32[16,1], index: 4, kind: input, shape index: {}]   ;;  %s495_s5 = inlined_call_operand.vmem [shape: f32[16,16], index: 5, kind: input, shape index: {}]   ;;  %s496_s7 = inlined_call_operand.vmem [shape: f32[16,128], index: 7, kind: output, shape index: {}]  }
   0x1   :  { %v28_v0 = vld [vmem:[%s489_s0] sm:$0xff]  ;;  %v29_v1 = vld [vmem:[%s489_s0 + $0x8] sm:$0xff]  ;;  %389 = vset.pattern.permute.xlu0 %v391_v2  ;;  %390 = vset.pattern.permute.xlu1 %v391_v2  ;;  %v30_v6 = vld [vmem:[%s489_s0 + $0x10] sm:$0xff] }
   0x2   :  { %v376_v3 = vpack.c.bf16 %v29_v1, %v28_v0  ;;  %v26_v4 = vld [vmem:[%s490_s1] sm:$0xff]  ;;  %v32_v7 = vld [vmem:[%s491_s2 + $0x8] sm:$0xff] }
   0x3   :  { %v31_v5 = vld [vmem:[%s491_s2] sm:$0xff]  ;;  %359 = vmatprep.mubr.msk.f32.mxu0 %vm43_vm0, %v26_v4  ;;  %v27_v8 = vld [vmem:[%s490_s1 + $0x8] sm:$0xff] }
   0x4   :  { %35 = vperm.xlu0 %389, %v31_v5   ;;  %377 = vmatprep.subr.bf16.mxu0 %v376_v3  ;;  %v235_v9 = vld [vmem:[%s492_s6] sm:$0xff]  ;;  %v134_v12 = vld [vmem:[%s494_s4 + $0x8] sm:$0xff] }
   0x5   :  { %379 = vmatpush3.bf16.msra.mxu0 %v376_v3  ;;  %v131_v10 = vld [vmem:[%s493_s3] sm:$0xff]  ;;  %v236_v13 = vld [vmem:[%s492_s6 + $0x8] sm:$0xff] }
   0x6   :  { %357 = vmatprep.subr.mxu0 %v30_v6  ;;  %366 = vmatprep.mubr.msk.f32.mxu1 %vm145_vm1, %v131_v10  ;;  %v133_v11 = vld [vmem:[%s494_s4] sm:$0xff]  ;;  %v132_v25 = vld [vmem:[%s493_s3 + $0x8] sm:$0xff] }
   0x7   :  { %137 = vperm.xlu1 %390, %v133_v11   ;;  %v233_v26 = vld [vmem:[%s495_s5] sm:$0xff]  ;;  %v234_v38 = vld [vmem:[%s495_s5 + $0x8] sm:$0xff] }
   0x8   :  { %40 = vperm.xlu0 %389, %v32_v7  }
   0x9   :  { %358 = vmatpush3.msra.mxu0 %v30_v6 }
   0xa   :  { %360 = vmatmul.mubr.msk.f32.vlgmr.msra.gmra.mrb[0].mxu0 %vm43_vm0, %v27_v8 }
   0xb   :  { %142 = vperm.xlu1 %390, %v134_v12  }
   0xc   :  { %239 = vperm.xlu0 %389, %v235_v9  }
   0xf   :  { %244 = vperm.xlu1 %390, %v236_v13  }
  0x83   :  { %v36_v14 = vpop.permute.xlu0 %35 }
  0x86   :  { %v138_v27 = vpop.permute.xlu1 %137 }
  0x87   :  { %v41_v15 = vpop.permute.xlu0 %40 }
  0x8a   :  { %v143_v28 = vpop.permute.xlu1 %142 }
  0x8b   :  { %v240_v41 = vpop.permute.xlu0 %239 }
  0x8e   :  { %v245_v39 = vpop.permute.xlu1 %244 }
  0xdd   :  { %v361_v16 = vpop.f32.mrb[0].mxu0 }
  0xde   :  { %v122_v17 = vadd.f32 %v361_v16, %v41_v15  ;;  %v116_v18 = vpop.f32.mrb[1].mxu0 }
  0xdf   :  { %v117_v19 = vadd.f32 %v116_v18, %v36_v14 }
  0xe0   :  { %v128_v20 = vmul.f32 0.1, %v122_v17  ;;  %vm126_vm2 = vcmp.ge.f32.partialorder %v122_v17, 0.0 }
  0xe1   :  { %v127_v21 = vmul.f32 0.1, %v117_v19  ;;  %vm125_vm3 = vcmp.ge.f32.partialorder %v117_v19, 0.0 }
  0xe2   :  { %v130_v22 = vsel %vm126_vm2, %v122_v17, %v128_v20 }
  0xe3   :  { %v129_v23 = vsel %vm125_vm3, %v117_v19, %v127_v21 }
  0xe4   :  { %v380_v24 = vpack.c.bf16 %v130_v22, %v129_v23 }
  0xe6   :  { %381 = vmatprep.subr.bf16.mxu1 %v380_v24 }
  0xe7   :  { %383 = vmatpush3.bf16.msra.mxu1 %v380_v24 }
  0xea   :  { %367 = vmatmul.mubr.msk.f32.vlgmr.msra.gmra.mrb[0].mxu1 %vm145_vm1, %v132_v25 }
  0xeb   :  { %373 = vmatprep.mubr.msk.f32.mxu1 %vm145_vm1, %v233_v26 }
 0x1bd   :  { %v368_v29 = vpop.f32.mrb[0].mxu1 }
 0x1be   :  { %v224_v30 = vadd.f32 %v368_v29, %v143_v28  ;;  %v218_v31 = vpop.f32.mrb[1].mxu1 }
 0x1bf   :  { %v219_v32 = vadd.f32 %v218_v31, %v138_v27 }
 0x1c0   :  { %vm228_vm4 = vcmp.ge.f32.partialorder %v224_v30, 0.0  ;;  %v230_v33 = vmul.f32 0.1, %v224_v30 }
 0x1c1   :  { %vm227_vm5 = vcmp.ge.f32.partialorder %v219_v32, 0.0  ;;  %v229_v34 = vmul.f32 0.1, %v219_v32 }
 0x1c2   :  { %v232_v35 = vsel %vm228_vm4, %v224_v30, %v230_v33 }
 0x1c3   :  { %v231_v36 = vsel %vm227_vm5, %v219_v32, %v229_v34 }
 0x1c4   :  { %v384_v37 = vpack.c.bf16 %v232_v35, %v231_v36 }
 0x1c6   :  { %385 = vmatprep.subr.bf16.mxu1 %v384_v37 }
 0x1c7   :  { %387 = vmatpush3.bf16.msra.mxu1 %v384_v37 }
 0x1ca   :  { %374 = vmatmul.mubr.msk.f32.vlgmr.msra.gmra.mrb[2].mxu1 %vm145_vm1, %v234_v38 }
 0x29d   :  { %v375_v40 = vpop.f32.mrb[2].mxu1 }
 0x29e   :  { %v325_v42 = vadd.f32 %v375_v40, %v245_v39  ;;  %v319_v43 = vpop.f32.mrb[3].mxu1 }
 0x29f   :  { %v320_v44 = vadd.f32 %v319_v43, %v240_v41 }
 0x2a0   :  { %329 = vst [vmem:[%s496_s7 + $0x8] sm:$0xff] %v325_v42 }
 0x2a1   :  { %328 = vst [vmem:[%s496_s7] sm:$0xff] %v320_v44 }

</bundles_post_ra>
